<compile_context>
chip_gen: v7x
topology: tpu7x:2x2x1
jax: 0.10.0
libtpu: 0.0.40
codegen_flags: <defaults>
</compile_context>

<pallas_src>
import math
import functools

import jax
import jax.numpy as jnp
from jax.experimental import pallas as pl
from jax.experimental.pallas import tpu as pltpu


# ----------------------------------------------------------------------------
# Fused decoder-layer kernel: one grid step == one batch element
# ----------------------------------------------------------------------------
def _decoder_layer_kernel(
        t_ref, qp_ref, m_ref, pp_ref,
        sa_wqk_ref, sa_bqk_ref, sa_wv_ref, sa_bv_ref, sa_wo_ref, sa_bo_ref,
        ca_wq_ref, ca_bq_ref, ca_wk_ref, ca_bk_ref,
        ca_wv_ref, ca_bv_ref, ca_wo_ref, ca_bo_ref,
        ln1_g_ref, ln1_b_ref, ln2_g_ref, ln2_b_ref,
        w1_ref, b1_ref, w2_ref, b2_ref,
        ln3_g_ref, ln3_b_ref,
        o_ref, *, nhead, eps):
    f32 = jnp.float32
    bf16 = jnp.bfloat16

    t = t_ref[0].astype(f32)      # (Lq, E)  residual stream (tgt)
    qp = qp_ref[0].astype(f32)    # (Lq, E)  query_pos
    m = m_ref[0].astype(f32)      # (S,  E)  memory
    pp = pp_ref[0].astype(f32)    # (S,  E)  pos

    E = t.shape[-1]
    hd = E // nhead

    def proj(x, w_ref, b_ref):
        # lane-dense 2D matmul: x (L, E) f32, w (E, Nout) bf16, b (1, Nout) f32
        return (jnp.dot(x.astype(bf16), w_ref[...], preferred_element_type=f32)
                + b_ref[...])

    def split_heads(x):
        # (L, H*hd) -> (H, L, hd): static lane slices + leading-axis stack
        return jnp.stack([x[:, h * hd:(h + 1) * hd] for h in range(nhead)], axis=0)

    def merge_heads(x):
        # (H, L, hd) -> (L, H*hd): lane concat == PyTorch concat(heads)
        return jnp.concatenate([x[h] for h in range(nhead)], axis=-1)

    def attn_core(q2, k2, v2, wo_ref, bo_ref):
        # q2: (Lq, E), k2/v2: (Lk, E) f32 (Q already pre-scaled) -> (Lq, E) f32
        qh = split_heads(q2).astype(bf16)          # (H, Lq, hd)
        kh = split_heads(k2).astype(bf16)          # (H, Lk, hd)
        vh = split_heads(v2).astype(bf16)          # (H, Lk, hd)
        s = jax.lax.dot_general(
            qh, kh, dimension_numbers=(((2,), (2,)), ((0,), (0,))),
            preferred_element_type=f32)            # (H, Lq, Lk)
        s = s - jnp.max(s, axis=-1, keepdims=True)
        p = jnp.exp(s)                             # unnormalized, in [0, 1]
        denom = jnp.sum(p, axis=-1, keepdims=True)        # (H, Lq, 1) f32
        ctx = jax.lax.dot_general(
            p.astype(bf16), vh, dimension_numbers=(((2,), (1,)), ((0,), (0,))),
            preferred_element_type=f32)            # (H, Lq, hd)
        # post-PV softmax normalization: ~S/hd fewer multiplies than scaling p
        ctx = ctx * pl.reciprocal(denom, approx=True)
        ctx2 = merge_heads(ctx)                    # (Lq, E)
        # single K=E out-projection (concat(heads) @ Wo^T)
        return (jnp.dot(ctx2.astype(bf16), wo_ref[...], preferred_element_type=f32)
                + bo_ref[...])

    def add_ln(x, y, g_ref, b_ref):
        r = x + y
        mu = jnp.mean(r, axis=-1, keepdims=True)
        c = r - mu
        var = jnp.mean(c * c, axis=-1, keepdims=True)
        return c * jax.lax.rsqrt(var + eps) * g_ref[...] + b_ref[...]

    # ---------------- self-attention: q = k = tgt + query_pos, v = tgt -------
    x_sa = t + qp
    qk = proj(x_sa, sa_wqk_ref, sa_bqk_ref)        # (Lq, 2E)  [Q*scale | K]
    v_sa = proj(t, sa_wv_ref, sa_bv_ref)           # (Lq, E)
    sa_out = attn_core(qk[:, :E], qk[:, E:], v_sa, sa_wo_ref, sa_bo_ref)
    t = add_ln(t, sa_out, ln1_g_ref, ln1_b_ref)

    # ---------------- cross-attention: q = tgt+query_pos, k = mem+pos, v = mem
    q_ca = proj(t + qp, ca_wq_ref, ca_bq_ref)      # (Lq, E)  (scale folded in W)
    k_ca = proj(m + pp, ca_wk_ref, ca_bk_ref)      # (S, E)
    v_ca = proj(m, ca_wv_ref, ca_bv_ref)           # (S, E)
    ca_out = attn_core(q_ca, k_ca, v_ca, ca_wo_ref, ca_bo_ref)
    t = add_ln(t, ca_out, ln2_g_ref, ln2_b_ref)

    # ---------------- FFN: linear1 -> ReLU -> linear2 -------------------------
    h = (jnp.dot(t.astype(bf16), w1_ref[...], preferred_element_type=f32)
         + b1_ref[...])
    h = jnp.maximum(h, 0.0)
    y = (jnp.dot(h.astype(bf16), w2_ref[...], preferred_element_type=f32)
         + b2_ref[...])
    t = add_ln(t, y, ln3_g_ref, ln3_b_ref)

    o_ref[0] = t.astype(o_ref.dtype)


# ----------------------------------------------------------------------------
# Wrapper: forward_post (normalize_before=False), PyTorch (L, N, E) convention
# ----------------------------------------------------------------------------
def transformer_decoder_layer(params, tgt, memory, pos=None, query_pos=None):
    """tgt: (Lq, N, E), memory: (S, N, E). Returns (Lq, N, E)."""
    nhead = params["nhead"]
    Lq, N, E = tgt.shape
    S = memory.shape[0]

    if query_pos is None:
        query_pos = jnp.zeros_like(tgt)
    if pos is None:
        pos = jnp.zeros_like(memory)

    # single layout change at the kernel boundary: (L, N, E) -> (N, L, E)
    t = jnp.transpose(tgt, (1, 0, 2))
    m = jnp.transpose(memory, (1, 0, 2))
    qp = jnp.transpose(query_pos, (1, 0, 2))
    pp = jnp.transpose(pos, (1, 0, 2))

    sa = params["self_attn"]
    ca = params["cross_attn"]
    n1, n2, n3 = params["norm1"], params["norm2"], params["norm3"]
    ff = params["ffn"]
    F = ff[0].shape[1]
    weights = (*sa, *ca, *n1, *n2, *ff, *n3)

    def act_spec(L):
        return pl.BlockSpec((1, L, E), lambda b: (b, 0, 0))

    def const_spec(x):
        zeros = (0,) * x.ndim
        return pl.BlockSpec(x.shape, lambda b, z=zeros: z)

    # explicit VMEM budget: weights (double-buffered by default) + activation
    # blocks + f32 intermediates (scores, ffn hidden, temporaries), with slack.
    weight_bytes = sum(int(w.size) * w.dtype.itemsize for w in weights)
    act_bytes = 2 * (2 * Lq * E + 2 * S * E + Lq * E) * tgt.dtype.itemsize
    inter_bytes = 4 * (nhead * Lq * (S + Lq) + Lq * F + 10 * Lq * E + 6 * S * E)
    est = 2 * weight_bytes + act_bytes + 2 * inter_bytes
    vmem_limit = int(min(64 * 1024 * 1024, max(16 * 1024 * 1024, 2 * est)))

    kernel = functools.partial(_decoder_layer_kernel, nhead=nhead, eps=1e-5)
    out = pl.pallas_call(
        kernel,
        out_shape=jax.ShapeDtypeStruct((N, Lq, E), tgt.dtype),
        grid_spec=pltpu.PrefetchScalarGridSpec(
            num_scalar_prefetch=0,
            grid=(N,),
            in_specs=[act_spec(Lq), act_spec(Lq), act_spec(S), act_spec(S)]
                     + [const_spec(w) for w in weights],
            out_specs=pl.BlockSpec((1, Lq, E), lambda b: (b, 0, 0)),
        ),
        compiler_params=pltpu.CompilerParams(
            dimension_semantics=("parallel",),
            vmem_limit_bytes=vmem_limit),
    )(t, qp, m, pp, *weights)

    return jnp.transpose(out, (1, 0, 2))


# ----------------------------------------------------------------------------
# Deterministic parameter construction (kernel layout, bf16 weights / f32 biases)
# ----------------------------------------------------------------------------
def init_params(key, d_model, nhead, dim_ff, weight_dtype=jnp.bfloat16):
    E, F, H = d_model, dim_ff, nhead
    hd = E // H
    scale = 1.0 / math.sqrt(hd)          # folded into Q in-proj weights & bias
    ks = iter(jax.random.split(key, 24))

    def rnd(shape, s=0.05):
        return jax.random.normal(next(ks), shape, jnp.float32) * s

    def self_attn_params():
        wq, wk, wv, wo = (rnd((E, E)) for _ in range(4))
        bq, bk, bv, bo = (rnd((E,), 0.01) for _ in range(4))
        # fused Q|K in-proj (x @ W^T layout), lane-dense (E, 2E)
        wqk = jnp.concatenate([wq.T * scale, wk.T], axis=1).astype(weight_dtype)
        bqk = jnp.concatenate([bq * scale, bk]).reshape(1, 2 * E)
        return (wqk, bqk,
                wv.T.astype(weight_dtype), bv.reshape(1, E),
                wo.T.astype(weight_dtype), bo.reshape(1, E))

    def cross_attn_params():
        wq, wk, wv, wo = (rnd((E, E)) for _ in range(4))
        bq, bk, bv, bo = (rnd((E,), 0.01) for _ in range(4))
        return ((wq.T * scale).astype(weight_dtype), (bq * scale).reshape(1, E),
                wk.T.astype(weight_dtype), bk.reshape(1, E),
                wv.T.astype(weight_dtype), bv.reshape(1, E),
                wo.T.astype(weight_dtype), bo.reshape(1, E))

    def ln_params():
        return (jnp.ones((1, E), jnp.float32), jnp.zeros((1, E), jnp.float32))

    w1 = rnd((F, E)); b1 = rnd((F,), 0.01)      # linear1 (PyTorch (out, in) layout)
    w2 = rnd((E, F)); b2 = rnd((E,), 0.01)      # linear2

    return {
        "nhead": H,
        "self_attn": self_attn_params(),
        "cross_attn": cross_attn_params(),
        "norm1": ln_params(),
        "norm2": ln_params(),
        "ffn": (w1.T.astype(weight_dtype), b1.reshape(1, F),
                w2.T.astype(weight_dtype), b2.reshape(1, E)),
        "norm3": ln_params(),
    }


if __name__ == "__main__":
    d_model, nhead, dim_ff = 32, 4, 64
    Lq, S, N = 8, 16, 2     # num queries, memory length (H*W), batch

    key = jax.random.PRNGKey(0)
    k_t, k_m, k_p, k_qp, k_par = jax.random.split(key, 5)

    tgt = jax.random.normal(k_t, (Lq, N, d_model), jnp.float32)
    memory = jax.random.normal(k_m, (S, N, d_model), jnp.float32)
    pos = jax.random.normal(k_p, (S, N, d_model), jnp.float32) * 0.1
    query_pos = jax.random.normal(k_qp, (Lq, N, d_model), jnp.float32) * 0.1

    params = init_params(k_par, d_model, nhead, dim_ff)

    out = transformer_decoder_layer(params, tgt, memory, pos=pos, query_pos=query_pos)
    out = jax.block_until_ready(out)

    assert out.shape == (Lq, N, d_model)
    assert bool(jnp.all(jnp.isfinite(out)))
    print("KERNEL_OK")
</pallas_src>

<mosaic_0001>
module attributes {stable_mosaic.version = 11 : i64} {
  func.func @_decoder_layer_kernel(%arg0: i32, %arg1: memref<1x8x32xf32, #tpu.memory_space<vmem>>, %arg2: memref<1x8x32xf32, #tpu.memory_space<vmem>>, %arg3: memref<1x16x32xf32, #tpu.memory_space<vmem>>, %arg4: memref<1x16x32xf32, #tpu.memory_space<vmem>>, %arg5: memref<32x64xbf16, #tpu.memory_space<vmem>>, %arg6: memref<1x64xf32, #tpu.memory_space<vmem>>, %arg7: memref<32x32xbf16, #tpu.memory_space<vmem>>, %arg8: memref<1x32xf32, #tpu.memory_space<vmem>>, %arg9: memref<32x32xbf16, #tpu.memory_space<vmem>>, %arg10: memref<1x32xf32, #tpu.memory_space<vmem>>, %arg11: memref<32x32xbf16, #tpu.memory_space<vmem>>, %arg12: memref<1x32xf32, #tpu.memory_space<vmem>>, %arg13: memref<32x32xbf16, #tpu.memory_space<vmem>>, %arg14: memref<1x32xf32, #tpu.memory_space<vmem>>, %arg15: memref<32x32xbf16, #tpu.memory_space<vmem>>, %arg16: memref<1x32xf32, #tpu.memory_space<vmem>>, %arg17: memref<32x32xbf16, #tpu.memory_space<vmem>>, %arg18: memref<1x32xf32, #tpu.memory_space<vmem>>, %arg19: memref<1x32xf32, #tpu.memory_space<vmem>>, %arg20: memref<1x32xf32, #tpu.memory_space<vmem>>, %arg21: memref<1x32xf32, #tpu.memory_space<vmem>>, %arg22: memref<1x32xf32, #tpu.memory_space<vmem>>, %arg23: memref<32x64xbf16, #tpu.memory_space<vmem>>, %arg24: memref<1x64xf32, #tpu.memory_space<vmem>>, %arg25: memref<64x32xbf16, #tpu.memory_space<vmem>>, %arg26: memref<1x32xf32, #tpu.memory_space<vmem>>, %arg27: memref<1x32xf32, #tpu.memory_space<vmem>>, %arg28: memref<1x32xf32, #tpu.memory_space<vmem>>, %arg29: memref<1x8x32xf32, #tpu.memory_space<vmem>>) attributes {dimension_semantics = [#tpu.dimension_semantics<parallel>], iteration_bounds = array<i64: 2>, scalar_prefetch = 0 : i64, scratch_operands = 0 : i64, tpu.core_type = #tpu.core_type<tc>, window_params = [{transform_indices = @transform_0, window_bounds = array<i64: 1, 8, 32>}, {transform_indices = @transform_1, window_bounds = array<i64: 1, 8, 32>}, {transform_indices = @transform_2, window_bounds = array<i64: 1, 16, 32>}, {transform_indices = @transform_3, window_bounds = array<i64: 1, 16, 32>}, {pipeline_mode = #tpu.pipeline_mode<synchronous>, transform_indices = @transform_4, window_bounds = array<i64: 32, 64>}, {pipeline_mode = #tpu.pipeline_mode<synchronous>, transform_indices = @transform_5, window_bounds = array<i64: 1, 64>}, {pipeline_mode = #tpu.pipeline_mode<synchronous>, transform_indices = @transform_6, window_bounds = array<i64: 32, 32>}, {pipeline_mode = #tpu.pipeline_mode<synchronous>, transform_indices = @transform_7, window_bounds = array<i64: 1, 32>}, {pipeline_mode = #tpu.pipeline_mode<synchronous>, transform_indices = @transform_8, window_bounds = array<i64: 32, 32>}, {pipeline_mode = #tpu.pipeline_mode<synchronous>, transform_indices = @transform_9, window_bounds = array<i64: 1, 32>}, {pipeline_mode = #tpu.pipeline_mode<synchronous>, transform_indices = @transform_10, window_bounds = array<i64: 32, 32>}, {pipeline_mode = #tpu.pipeline_mode<synchronous>, transform_indices = @transform_11, window_bounds = array<i64: 1, 32>}, {pipeline_mode = #tpu.pipeline_mode<synchronous>, transform_indices = @transform_12, window_bounds = array<i64: 32, 32>}, {pipeline_mode = #tpu.pipeline_mode<synchronous>, transform_indices = @transform_13, window_bounds = array<i64: 1, 32>}, {pipeline_mode = #tpu.pipeline_mode<synchronous>, transform_indices = @transform_14, window_bounds = array<i64: 32, 32>}, {pipeline_mode = #tpu.pipeline_mode<synchronous>, transform_indices = @transform_15, window_bounds = array<i64: 1, 32>}, {pipeline_mode = #tpu.pipeline_mode<synchronous>, transform_indices = @transform_16, window_bounds = array<i64: 32, 32>}, {pipeline_mode = #tpu.pipeline_mode<synchronous>, transform_indices = @transform_17, window_bounds = array<i64: 1, 32>}, {pipeline_mode = #tpu.pipeline_mode<synchronous>, transform_indices = @transform_18, window_bounds = array<i64: 1, 32>}, {pipeline_mode = #tpu.pipeline_mode<synchronous>, transform_indices = @transform_19, window_bounds = array<i64: 1, 32>}, {pipeline_mode = #tpu.pipeline_mode<synchronous>, transform_indices = @transform_20, window_bounds = array<i64: 1, 32>}, {pipeline_mode = #tpu.pipeline_mode<synchronous>, transform_indices = @transform_21, window_bounds = array<i64: 1, 32>}, {pipeline_mode = #tpu.pipeline_mode<synchronous>, transform_indices = @transform_22, window_bounds = array<i64: 32, 64>}, {pipeline_mode = #tpu.pipeline_mode<synchronous>, transform_indices = @transform_23, window_bounds = array<i64: 1, 64>}, {pipeline_mode = #tpu.pipeline_mode<synchronous>, transform_indices = @transform_24, window_bounds = array<i64: 64, 32>}, {pipeline_mode = #tpu.pipeline_mode<synchronous>, transform_indices = @transform_25, window_bounds = array<i64: 1, 32>}, {pipeline_mode = #tpu.pipeline_mode<synchronous>, transform_indices = @transform_26, window_bounds = array<i64: 1, 32>}, {pipeline_mode = #tpu.pipeline_mode<synchronous>, transform_indices = @transform_27, window_bounds = array<i64: 1, 32>}, {transform_indices = @transform_28, window_bounds = array<i64: 1, 8, 32>}]} {
    %c0 = arith.constant 0 : index
    %c0_0 = arith.constant 0 : index
    %c0_1 = arith.constant 0 : index
    %0 = vector.load %arg1[%c0, %c0_0, %c0_1] : memref<1x8x32xf32, #tpu.memory_space<vmem>>, vector<1x8x32xf32>
    %1 = vector.shape_cast %0 : vector<1x8x32xf32> to vector<8x32xf32>
    %c0_2 = arith.constant 0 : index
    %c0_3 = arith.constant 0 : index
    %c0_4 = arith.constant 0 : index
    %2 = vector.load %arg2[%c0_2, %c0_3, %c0_4] : memref<1x8x32xf32, #tpu.memory_space<vmem>>, vector<1x8x32xf32>
    %3 = vector.shape_cast %2 : vector<1x8x32xf32> to vector<8x32xf32>
    %c0_5 = arith.constant 0 : index
    %c0_6 = arith.constant 0 : index
    %c0_7 = arith.constant 0 : index
    %4 = vector.load %arg3[%c0_5, %c0_6, %c0_7] : memref<1x16x32xf32, #tpu.memory_space<vmem>>, vector<1x16x32xf32>
    %5 = vector.shape_cast %4 : vector<1x16x32xf32> to vector<16x32xf32>
    %c0_8 = arith.constant 0 : index
    %c0_9 = arith.constant 0 : index
    %c0_10 = arith.constant 0 : index
    %6 = vector.load %arg4[%c0_8, %c0_9, %c0_10] : memref<1x16x32xf32, #tpu.memory_space<vmem>>, vector<1x16x32xf32>
    %7 = vector.shape_cast %6 : vector<1x16x32xf32> to vector<16x32xf32>
    %8 = arith.addf %1, %3 : vector<8x32xf32>
    %9 = arith.truncf %8 : vector<8x32xf32> to vector<8x32xbf16>
    %c0_11 = arith.constant 0 : index
    %c0_12 = arith.constant 0 : index
    %10 = vector.load %arg5[%c0_11, %c0_12] : memref<32x64xbf16, #tpu.memory_space<vmem>>, vector<32x64xbf16>
    %cst = arith.constant dense<0.000000e+00> : vector<8x64xf32>
    %11 = tpu.matmul %9, %10, %cst {dimension_numbers = #tpu.dot_dimension_numbers<[1], [0], [0], [1], [0, 0, 1, 1], [], []>} : vector<8x32xbf16>, vector<32x64xbf16>, vector<8x64xf32> -> vector<8x64xf32>
    %c0_13 = arith.constant 0 : index
    %c0_14 = arith.constant 0 : index
    %12 = vector.load %arg6[%c0_13, %c0_14] : memref<1x64xf32, #tpu.memory_space<vmem>>, vector<1x64xf32>
    %13 = vector.broadcast %12 : vector<1x64xf32> to vector<8x64xf32>
    %14 = arith.addf %11, %13 : vector<8x64xf32>
    %15 = arith.truncf %1 : vector<8x32xf32> to vector<8x32xbf16>
    %c0_15 = arith.constant 0 : index
    %c0_16 = arith.constant 0 : index
    %16 = vector.load %arg7[%c0_15, %c0_16] : memref<32x32xbf16, #tpu.memory_space<vmem>>, vector<32x32xbf16>
    %cst_17 = arith.constant dense<0.000000e+00> : vector<8x32xf32>
    %17 = tpu.matmul %15, %16, %cst_17 {dimension_numbers = #tpu.dot_dimension_numbers<[1], [0], [0], [1], [0, 0, 1, 1], [], []>} : vector<8x32xbf16>, vector<32x32xbf16>, vector<8x32xf32> -> vector<8x32xf32>
    %c0_18 = arith.constant 0 : index
    %c0_19 = arith.constant 0 : index
    %18 = vector.load %arg8[%c0_18, %c0_19] : memref<1x32xf32, #tpu.memory_space<vmem>>, vector<1x32xf32>
    %19 = vector.broadcast %18 : vector<1x32xf32> to vector<8x32xf32>
    %20 = arith.addf %17, %19 : vector<8x32xf32>
    %21 = vector.extract_strided_slice %14 {offsets = [0, 0], sizes = [8, 32], strides = [1, 1]} : vector<8x64xf32> to vector<8x32xf32>
    %22 = vector.extract_strided_slice %14 {offsets = [0, 32], sizes = [8, 32], strides = [1, 1]} : vector<8x64xf32> to vector<8x32xf32>
    %23 = vector.extract_strided_slice %21 {offsets = [0, 0], sizes = [8, 8], strides = [1, 1]} : vector<8x32xf32> to vector<8x8xf32>
    %24 = vector.extract_strided_slice %21 {offsets = [0, 8], sizes = [8, 8], strides = [1, 1]} : vector<8x32xf32> to vector<8x8xf32>
    %25 = vector.extract_strided_slice %21 {offsets = [0, 16], sizes = [8, 8], strides = [1, 1]} : vector<8x32xf32> to vector<8x8xf32>
    %26 = vector.extract_strided_slice %21 {offsets = [0, 24], sizes = [8, 8], strides = [1, 1]} : vector<8x32xf32> to vector<8x8xf32>
    %27 = vector.shape_cast %23 : vector<8x8xf32> to vector<1x8x8xf32>
    %28 = vector.shape_cast %24 : vector<8x8xf32> to vector<1x8x8xf32>
    %29 = vector.shape_cast %25 : vector<8x8xf32> to vector<1x8x8xf32>
    %30 = vector.shape_cast %26 : vector<8x8xf32> to vector<1x8x8xf32>
    %31 = tpu.concatenate %27, %28, %29, %30 in 0 : vector<1x8x8xf32>, vector<1x8x8xf32>, vector<1x8x8xf32>, vector<1x8x8xf32> -> vector<4x8x8xf32>
    %32 = arith.truncf %31 : vector<4x8x8xf32> to vector<4x8x8xbf16>
    %33 = vector.extract_strided_slice %22 {offsets = [0, 0], sizes = [8, 8], strides = [1, 1]} : vector<8x32xf32> to vector<8x8xf32>
    %34 = vector.extract_strided_slice %22 {offsets = [0, 8], sizes = [8, 8], strides = [1, 1]} : vector<8x32xf32> to vector<8x8xf32>
    %35 = vector.extract_strided_slice %22 {offsets = [0, 16], sizes = [8, 8], strides = [1, 1]} : vector<8x32xf32> to vector<8x8xf32>
    %36 = vector.extract_strided_slice %22 {offsets = [0, 24], sizes = [8, 8], strides = [1, 1]} : vector<8x32xf32> to vector<8x8xf32>
    %37 = vector.shape_cast %33 : vector<8x8xf32> to vector<1x8x8xf32>
    %38 = vector.shape_cast %34 : vector<8x8xf32> to vector<1x8x8xf32>
    %39 = vector.shape_cast %35 : vector<8x8xf32> to vector<1x8x8xf32>
    %40 = vector.shape_cast %36 : vector<8x8xf32> to vector<1x8x8xf32>
    %41 = tpu.concatenate %37, %38, %39, %40 in 0 : vector<1x8x8xf32>, vector<1x8x8xf32>, vector<1x8x8xf32>, vector<1x8x8xf32> -> vector<4x8x8xf32>
    %42 = arith.truncf %41 : vector<4x8x8xf32> to vector<4x8x8xbf16>
    %43 = vector.extract_strided_slice %20 {offsets = [0, 0], sizes = [8, 8], strides = [1, 1]} : vector<8x32xf32> to vector<8x8xf32>
    %44 = vector.extract_strided_slice %20 {offsets = [0, 8], sizes = [8, 8], strides = [1, 1]} : vector<8x32xf32> to vector<8x8xf32>
    %45 = vector.extract_strided_slice %20 {offsets = [0, 16], sizes = [8, 8], strides = [1, 1]} : vector<8x32xf32> to vector<8x8xf32>
    %46 = vector.extract_strided_slice %20 {offsets = [0, 24], sizes = [8, 8], strides = [1, 1]} : vector<8x32xf32> to vector<8x8xf32>
    %47 = vector.shape_cast %43 : vector<8x8xf32> to vector<1x8x8xf32>
    %48 = vector.shape_cast %44 : vector<8x8xf32> to vector<1x8x8xf32>
    %49 = vector.shape_cast %45 : vector<8x8xf32> to vector<1x8x8xf32>
    %50 = vector.shape_cast %46 : vector<8x8xf32> to vector<1x8x8xf32>
    %51 = tpu.concatenate %47, %48, %49, %50 in 0 : vector<1x8x8xf32>, vector<1x8x8xf32>, vector<1x8x8xf32>, vector<1x8x8xf32> -> vector<4x8x8xf32>
    %52 = arith.truncf %51 : vector<4x8x8xf32> to vector<4x8x8xbf16>
    %cst_20 = arith.constant dense<0.000000e+00> : vector<4x8x8xf32>
    %53 = tpu.matmul %32, %42, %cst_20 {dimension_numbers = #tpu.dot_dimension_numbers<[2], [2], [1], [1], [0, 0, 0, 1, 1, 1], [0], [0]>} : vector<4x8x8xbf16>, vector<4x8x8xbf16>, vector<4x8x8xf32> -> vector<4x8x8xf32>
    %cst_21 = arith.constant dense<0xFF800000> : vector<4x8xf32>
    %54 = vector.multi_reduction <maximumf>, %53, %cst_21 [2] : vector<4x8x8xf32> to vector<4x8xf32>
    %55 = vector.shape_cast %54 : vector<4x8xf32> to vector<4x8x1xf32>
    %56 = vector.broadcast %55 : vector<4x8x1xf32> to vector<4x8x8xf32>
    %57 = arith.subf %53, %56 : vector<4x8x8xf32>
    %58 = math.exp %57 : vector<4x8x8xf32>
    %cst_22 = arith.constant dense<0.000000e+00> : vector<4x8xf32>
    %59 = vector.multi_reduction <add>, %58, %cst_22 [2] : vector<4x8x8xf32> to vector<4x8xf32>
    %60 = vector.shape_cast %59 : vector<4x8xf32> to vector<4x8x1xf32>
    %61 = arith.truncf %58 : vector<4x8x8xf32> to vector<4x8x8xbf16>
    %cst_23 = arith.constant dense<0.000000e+00> : vector<4x8x8xf32>
    %62 = tpu.matmul %61, %52, %cst_23 {dimension_numbers = #tpu.dot_dimension_numbers<[2], [1], [1], [2], [0, 0, 0, 1, 1, 2], [0], [0]>} : vector<4x8x8xbf16>, vector<4x8x8xbf16>, vector<4x8x8xf32> -> vector<4x8x8xf32>
    %63 = tpu.reciprocal %60 {approx = true} : vector<4x8x1xf32> -> vector<4x8x1xf32>
    %64 = vector.broadcast %63 : vector<4x8x1xf32> to vector<4x8x8xf32>
    %65 = arith.mulf %62, %64 : vector<4x8x8xf32>
    %66 = vector.extract_strided_slice %65 {offsets = [0, 0, 0], sizes = [1, 8, 8], strides = [1, 1, 1]} : vector<4x8x8xf32> to vector<1x8x8xf32>
    %67 = vector.shape_cast %66 : vector<1x8x8xf32> to vector<8x8xf32>
    %68 = vector.extract_strided_slice %65 {offsets = [1, 0, 0], sizes = [1, 8, 8], strides = [1, 1, 1]} : vector<4x8x8xf32> to vector<1x8x8xf32>
    %69 = vector.shape_cast %68 : vector<1x8x8xf32> to vector<8x8xf32>
    %70 = vector.extract_strided_slice %65 {offsets = [2, 0, 0], sizes = [1, 8, 8], strides = [1, 1, 1]} : vector<4x8x8xf32> to vector<1x8x8xf32>
    %71 = vector.shape_cast %70 : vector<1x8x8xf32> to vector<8x8xf32>
    %72 = vector.extract_strided_slice %65 {offsets = [3, 0, 0], sizes = [1, 8, 8], strides = [1, 1, 1]} : vector<4x8x8xf32> to vector<1x8x8xf32>
    %73 = vector.shape_cast %72 : vector<1x8x8xf32> to vector<8x8xf32>
    %74 = tpu.concatenate %67, %69, %71, %73 in 1 : vector<8x8xf32>, vector<8x8xf32>, vector<8x8xf32>, vector<8x8xf32> -> vector<8x32xf32>
    %75 = arith.truncf %74 : vector<8x32xf32> to vector<8x32xbf16>
    %c0_24 = arith.constant 0 : index
    %c0_25 = arith.constant 0 : index
    %76 = vector.load %arg9[%c0_24, %c0_25] : memref<32x32xbf16, #tpu.memory_space<vmem>>, vector<32x32xbf16>
    %cst_26 = arith.constant dense<0.000000e+00> : vector<8x32xf32>
    %77 = tpu.matmul %75, %76, %cst_26 {dimension_numbers = #tpu.dot_dimension_numbers<[1], [0], [0], [1], [0, 0, 1, 1], [], []>} : vector<8x32xbf16>, vector<32x32xbf16>, vector<8x32xf32> -> vector<8x32xf32>
    %c0_27 = arith.constant 0 : index
    %c0_28 = arith.constant 0 : index
    %78 = vector.load %arg10[%c0_27, %c0_28] : memref<1x32xf32, #tpu.memory_space<vmem>>, vector<1x32xf32>
    %79 = vector.broadcast %78 : vector<1x32xf32> to vector<8x32xf32>
    %80 = arith.addf %77, %79 : vector<8x32xf32>
    %81 = arith.addf %1, %80 : vector<8x32xf32>
    %cst_29 = arith.constant dense<0.000000e+00> : vector<8xf32>
    %82 = vector.multi_reduction <add>, %81, %cst_29 [1] : vector<8x32xf32> to vector<8xf32>
    %83 = vector.shape_cast %82 : vector<8xf32> to vector<8x1xf32>
    %cst_30 = arith.constant 3.200000e+01 : f32
    %84 = vector.broadcast %cst_30 : f32 to vector<8x1xf32>
    %85 = arith.divf %83, %84 : vector<8x1xf32>
    %86 = vector.broadcast %85 : vector<8x1xf32> to vector<8x32xf32>
    %87 = arith.subf %81, %86 : vector<8x32xf32>
    %88 = arith.mulf %87, %87 : vector<8x32xf32>
    %cst_31 = arith.constant dense<0.000000e+00> : vector<8xf32>
    %89 = vector.multi_reduction <add>, %88, %cst_31 [1] : vector<8x32xf32> to vector<8xf32>
    %90 = vector.shape_cast %89 : vector<8xf32> to vector<8x1xf32>
    %cst_32 = arith.constant 3.200000e+01 : f32
    %91 = vector.broadcast %cst_32 : f32 to vector<8x1xf32>
    %92 = arith.divf %90, %91 : vector<8x1xf32>
    %cst_33 = arith.constant 9.99999974E-6 : f32
    %93 = vector.broadcast %cst_33 : f32 to vector<8x1xf32>
    %94 = arith.addf %92, %93 : vector<8x1xf32>
    %95 = math.rsqrt %94 : vector<8x1xf32>
    %96 = vector.broadcast %95 : vector<8x1xf32> to vector<8x32xf32>
    %97 = arith.mulf %87, %96 : vector<8x32xf32>
    %c0_34 = arith.constant 0 : index
    %c0_35 = arith.constant 0 : index
    %98 = vector.load %arg19[%c0_34, %c0_35] : memref<1x32xf32, #tpu.memory_space<vmem>>, vector<1x32xf32>
    %99 = vector.broadcast %98 : vector<1x32xf32> to vector<8x32xf32>
    %100 = arith.mulf %97, %99 : vector<8x32xf32>
    %c0_36 = arith.constant 0 : index
    %c0_37 = arith.constant 0 : index
    %101 = vector.load %arg20[%c0_36, %c0_37] : memref<1x32xf32, #tpu.memory_space<vmem>>, vector<1x32xf32>
    %102 = vector.broadcast %101 : vector<1x32xf32> to vector<8x32xf32>
    %103 = arith.addf %100, %102 : vector<8x32xf32>
    %104 = arith.addf %103, %3 : vector<8x32xf32>
    %105 = arith.truncf %104 : vector<8x32xf32> to vector<8x32xbf16>
    %c0_38 = arith.constant 0 : index
    %c0_39 = arith.constant 0 : index
    %106 = vector.load %arg11[%c0_38, %c0_39] : memref<32x32xbf16, #tpu.memory_space<vmem>>, vector<32x32xbf16>
    %cst_40 = arith.constant dense<0.000000e+00> : vector<8x32xf32>
    %107 = tpu.matmul %105, %106, %cst_40 {dimension_numbers = #tpu.dot_dimension_numbers<[1], [0], [0], [1], [0, 0, 1, 1], [], []>} : vector<8x32xbf16>, vector<32x32xbf16>, vector<8x32xf32> -> vector<8x32xf32>
    %c0_41 = arith.constant 0 : index
    %c0_42 = arith.constant 0 : index
    %108 = vector.load %arg12[%c0_41, %c0_42] : memref<1x32xf32, #tpu.memory_space<vmem>>, vector<1x32xf32>
    %109 = vector.broadcast %108 : vector<1x32xf32> to vector<8x32xf32>
    %110 = arith.addf %107, %109 : vector<8x32xf32>
    %111 = arith.addf %5, %7 : vector<16x32xf32>
    %112 = arith.truncf %111 : vector<16x32xf32> to vector<16x32xbf16>
    %c0_43 = arith.constant 0 : index
    %c0_44 = arith.constant 0 : index
    %113 = vector.load %arg13[%c0_43, %c0_44] : memref<32x32xbf16, #tpu.memory_space<vmem>>, vector<32x32xbf16>
    %cst_45 = arith.constant dense<0.000000e+00> : vector<16x32xf32>
    %114 = tpu.matmul %112, %113, %cst_45 {dimension_numbers = #tpu.dot_dimension_numbers<[1], [0], [0], [1], [0, 0, 1, 1], [], []>} : vector<16x32xbf16>, vector<32x32xbf16>, vector<16x32xf32> -> vector<16x32xf32>
    %c0_46 = arith.constant 0 : index
    %c0_47 = arith.constant 0 : index
    %115 = vector.load %arg14[%c0_46, %c0_47] : memref<1x32xf32, #tpu.memory_space<vmem>>, vector<1x32xf32>
    %116 = vector.broadcast %115 : vector<1x32xf32> to vector<16x32xf32>
    %117 = arith.addf %114, %116 : vector<16x32xf32>
    %118 = arith.truncf %5 : vector<16x32xf32> to vector<16x32xbf16>
    %c0_48 = arith.constant 0 : index
    %c0_49 = arith.constant 0 : index
    %119 = vector.load %arg15[%c0_48, %c0_49] : memref<32x32xbf16, #tpu.memory_space<vmem>>, vector<32x32xbf16>
    %cst_50 = arith.constant dense<0.000000e+00> : vector<16x32xf32>
    %120 = tpu.matmul %118, %119, %cst_50 {dimension_numbers = #tpu.dot_dimension_numbers<[1], [0], [0], [1], [0, 0, 1, 1], [], []>} : vector<16x32xbf16>, vector<32x32xbf16>, vector<16x32xf32> -> vector<16x32xf32>
    %c0_51 = arith.constant 0 : index
    %c0_52 = arith.constant 0 : index
    %121 = vector.load %arg16[%c0_51, %c0_52] : memref<1x32xf32, #tpu.memory_space<vmem>>, vector<1x32xf32>
    %122 = vector.broadcast %121 : vector<1x32xf32> to vector<16x32xf32>
    %123 = arith.addf %120, %122 : vector<16x32xf32>
    %124 = vector.extract_strided_slice %110 {offsets = [0, 0], sizes = [8, 8], strides = [1, 1]} : vector<8x32xf32> to vector<8x8xf32>
    %125 = vector.extract_strided_slice %110 {offsets = [0, 8], sizes = [8, 8], strides = [1, 1]} : vector<8x32xf32> to vector<8x8xf32>
    %126 = vector.extract_strided_slice %110 {offsets = [0, 16], sizes = [8, 8], strides = [1, 1]} : vector<8x32xf32> to vector<8x8xf32>
    %127 = vector.extract_strided_slice %110 {offsets = [0, 24], sizes = [8, 8], strides = [1, 1]} : vector<8x32xf32> to vector<8x8xf32>
    %128 = vector.shape_cast %124 : vector<8x8xf32> to vector<1x8x8xf32>
    %129 = vector.shape_cast %125 : vector<8x8xf32> to vector<1x8x8xf32>
    %130 = vector.shape_cast %126 : vector<8x8xf32> to vector<1x8x8xf32>
    %131 = vector.shape_cast %127 : vector<8x8xf32> to vector<1x8x8xf32>
    %132 = tpu.concatenate %128, %129, %130, %131 in 0 : vector<1x8x8xf32>, vector<1x8x8xf32>, vector<1x8x8xf32>, vector<1x8x8xf32> -> vector<4x8x8xf32>
    %133 = arith.truncf %132 : vector<4x8x8xf32> to vector<4x8x8xbf16>
    %134 = vector.extract_strided_slice %117 {offsets = [0, 0], sizes = [16, 8], strides = [1, 1]} : vector<16x32xf32> to vector<16x8xf32>
    %135 = vector.extract_strided_slice %117 {offsets = [0, 8], sizes = [16, 8], strides = [1, 1]} : vector<16x32xf32> to vector<16x8xf32>
    %136 = vector.extract_strided_slice %117 {offsets = [0, 16], sizes = [16, 8], strides = [1, 1]} : vector<16x32xf32> to vector<16x8xf32>
    %137 = vector.extract_strided_slice %117 {offsets = [0, 24], sizes = [16, 8], strides = [1, 1]} : vector<16x32xf32> to vector<16x8xf32>
    %138 = vector.shape_cast %134 : vector<16x8xf32> to vector<1x16x8xf32>
    %139 = vector.shape_cast %135 : vector<16x8xf32> to vector<1x16x8xf32>
    %140 = vector.shape_cast %136 : vector<16x8xf32> to vector<1x16x8xf32>
    %141 = vector.shape_cast %137 : vector<16x8xf32> to vector<1x16x8xf32>
    %142 = tpu.concatenate %138, %139, %140, %141 in 0 : vector<1x16x8xf32>, vector<1x16x8xf32>, vector<1x16x8xf32>, vector<1x16x8xf32> -> vector<4x16x8xf32>
    %143 = arith.truncf %142 : vector<4x16x8xf32> to vector<4x16x8xbf16>
    %144 = vector.extract_strided_slice %123 {offsets = [0, 0], sizes = [16, 8], strides = [1, 1]} : vector<16x32xf32> to vector<16x8xf32>
    %145 = vector.extract_strided_slice %123 {offsets = [0, 8], sizes = [16, 8], strides = [1, 1]} : vector<16x32xf32> to vector<16x8xf32>
    %146 = vector.extract_strided_slice %123 {offsets = [0, 16], sizes = [16, 8], strides = [1, 1]} : vector<16x32xf32> to vector<16x8xf32>
    %147 = vector.extract_strided_slice %123 {offsets = [0, 24], sizes = [16, 8], strides = [1, 1]} : vector<16x32xf32> to vector<16x8xf32>
    %148 = vector.shape_cast %144 : vector<16x8xf32> to vector<1x16x8xf32>
    %149 = vector.shape_cast %145 : vector<16x8xf32> to vector<1x16x8xf32>
    %150 = vector.shape_cast %146 : vector<16x8xf32> to vector<1x16x8xf32>
    %151 = vector.shape_cast %147 : vector<16x8xf32> to vector<1x16x8xf32>
    %152 = tpu.concatenate %148, %149, %150, %151 in 0 : vector<1x16x8xf32>, vector<1x16x8xf32>, vector<1x16x8xf32>, vector<1x16x8xf32> -> vector<4x16x8xf32>
    %153 = arith.truncf %152 : vector<4x16x8xf32> to vector<4x16x8xbf16>
    %cst_53 = arith.constant dense<0.000000e+00> : vector<4x8x16xf32>
    %154 = tpu.matmul %133, %143, %cst_53 {dimension_numbers = #tpu.dot_dimension_numbers<[2], [2], [1], [1], [0, 0, 0, 1, 1, 1], [0], [0]>} : vector<4x8x8xbf16>, vector<4x16x8xbf16>, vector<4x8x16xf32> -> vector<4x8x16xf32>
    %cst_54 = arith.constant dense<0xFF800000> : vector<4x8xf32>
    %155 = vector.multi_reduction <maximumf>, %154, %cst_54 [2] : vector<4x8x16xf32> to vector<4x8xf32>
    %156 = vector.shape_cast %155 : vector<4x8xf32> to vector<4x8x1xf32>
    %157 = vector.broadcast %156 : vector<4x8x1xf32> to vector<4x8x16xf32>
    %158 = arith.subf %154, %157 : vector<4x8x16xf32>
    %159 = math.exp %158 : vector<4x8x16xf32>
    %cst_55 = arith.constant dense<0.000000e+00> : vector<4x8xf32>
    %160 = vector.multi_reduction <add>, %159, %cst_55 [2] : vector<4x8x16xf32> to vector<4x8xf32>
    %161 = vector.shape_cast %160 : vector<4x8xf32> to vector<4x8x1xf32>
    %162 = arith.truncf %159 : vector<4x8x16xf32> to vector<4x8x16xbf16>
    %cst_56 = arith.constant dense<0.000000e+00> : vector<4x8x8xf32>
    %163 = tpu.matmul %162, %153, %cst_56 {dimension_numbers = #tpu.dot_dimension_numbers<[2], [1], [1], [2], [0, 0, 0, 1, 1, 2], [0], [0]>} : vector<4x8x16xbf16>, vector<4x16x8xbf16>, vector<4x8x8xf32> -> vector<4x8x8xf32>
    %164 = tpu.reciprocal %161 {approx = true} : vector<4x8x1xf32> -> vector<4x8x1xf32>
    %165 = vector.broadcast %164 : vector<4x8x1xf32> to vector<4x8x8xf32>
    %166 = arith.mulf %163, %165 : vector<4x8x8xf32>
    %167 = vector.extract_strided_slice %166 {offsets = [0, 0, 0], sizes = [1, 8, 8], strides = [1, 1, 1]} : vector<4x8x8xf32> to vector<1x8x8xf32>
    %168 = vector.shape_cast %167 : vector<1x8x8xf32> to vector<8x8xf32>
    %169 = vector.extract_strided_slice %166 {offsets = [1, 0, 0], sizes = [1, 8, 8], strides = [1, 1, 1]} : vector<4x8x8xf32> to vector<1x8x8xf32>
    %170 = vector.shape_cast %169 : vector<1x8x8xf32> to vector<8x8xf32>
    %171 = vector.extract_strided_slice %166 {offsets = [2, 0, 0], sizes = [1, 8, 8], strides = [1, 1, 1]} : vector<4x8x8xf32> to vector<1x8x8xf32>
    %172 = vector.shape_cast %171 : vector<1x8x8xf32> to vector<8x8xf32>
    %173 = vector.extract_strided_slice %166 {offsets = [3, 0, 0], sizes = [1, 8, 8], strides = [1, 1, 1]} : vector<4x8x8xf32> to vector<1x8x8xf32>
    %174 = vector.shape_cast %173 : vector<1x8x8xf32> to vector<8x8xf32>
    %175 = tpu.concatenate %168, %170, %172, %174 in 1 : vector<8x8xf32>, vector<8x8xf32>, vector<8x8xf32>, vector<8x8xf32> -> vector<8x32xf32>
    %176 = arith.truncf %175 : vector<8x32xf32> to vector<8x32xbf16>
    %c0_57 = arith.constant 0 : index
    %c0_58 = arith.constant 0 : index
    %177 = vector.load %arg17[%c0_57, %c0_58] : memref<32x32xbf16, #tpu.memory_space<vmem>>, vector<32x32xbf16>
    %cst_59 = arith.constant dense<0.000000e+00> : vector<8x32xf32>
    %178 = tpu.matmul %176, %177, %cst_59 {dimension_numbers = #tpu.dot_dimension_numbers<[1], [0], [0], [1], [0, 0, 1, 1], [], []>} : vector<8x32xbf16>, vector<32x32xbf16>, vector<8x32xf32> -> vector<8x32xf32>
    %c0_60 = arith.constant 0 : index
    %c0_61 = arith.constant 0 : index
    %179 = vector.load %arg18[%c0_60, %c0_61] : memref<1x32xf32, #tpu.memory_space<vmem>>, vector<1x32xf32>
    %180 = vector.broadcast %179 : vector<1x32xf32> to vector<8x32xf32>
    %181 = arith.addf %178, %180 : vector<8x32xf32>
    %182 = arith.addf %103, %181 : vector<8x32xf32>
    %cst_62 = arith.constant dense<0.000000e+00> : vector<8xf32>
    %183 = vector.multi_reduction <add>, %182, %cst_62 [1] : vector<8x32xf32> to vector<8xf32>
    %184 = vector.shape_cast %183 : vector<8xf32> to vector<8x1xf32>
    %cst_63 = arith.constant 3.200000e+01 : f32
    %185 = vector.broadcast %cst_63 : f32 to vector<8x1xf32>
    %186 = arith.divf %184, %185 : vector<8x1xf32>
    %187 = vector.broadcast %186 : vector<8x1xf32> to vector<8x32xf32>
    %188 = arith.subf %182, %187 : vector<8x32xf32>
    %189 = arith.mulf %188, %188 : vector<8x32xf32>
    %cst_64 = arith.constant dense<0.000000e+00> : vector<8xf32>
    %190 = vector.multi_reduction <add>, %189, %cst_64 [1] : vector<8x32xf32> to vector<8xf32>
    %191 = vector.shape_cast %190 : vector<8xf32> to vector<8x1xf32>
    %cst_65 = arith.constant 3.200000e+01 : f32
    %192 = vector.broadcast %cst_65 : f32 to vector<8x1xf32>
    %193 = arith.divf %191, %192 : vector<8x1xf32>
    %cst_66 = arith.constant 9.99999974E-6 : f32
    %194 = vector.broadcast %cst_66 : f32 to vector<8x1xf32>
    %195 = arith.addf %193, %194 : vector<8x1xf32>
    %196 = math.rsqrt %195 : vector<8x1xf32>
    %197 = vector.broadcast %196 : vector<8x1xf32> to vector<8x32xf32>
    %198 = arith.mulf %188, %197 : vector<8x32xf32>
    %c0_67 = arith.constant 0 : index
    %c0_68 = arith.constant 0 : index
    %199 = vector.load %arg21[%c0_67, %c0_68] : memref<1x32xf32, #tpu.memory_space<vmem>>, vector<1x32xf32>
    %200 = vector.broadcast %199 : vector<1x32xf32> to vector<8x32xf32>
    %201 = arith.mulf %198, %200 : vector<8x32xf32>
    %c0_69 = arith.constant 0 : index
    %c0_70 = arith.constant 0 : index
    %202 = vector.load %arg22[%c0_69, %c0_70] : memref<1x32xf32, #tpu.memory_space<vmem>>, vector<1x32xf32>
    %203 = vector.broadcast %202 : vector<1x32xf32> to vector<8x32xf32>
    %204 = arith.addf %201, %203 : vector<8x32xf32>
    %205 = arith.truncf %204 : vector<8x32xf32> to vector<8x32xbf16>
    %c0_71 = arith.constant 0 : index
    %c0_72 = arith.constant 0 : index
    %206 = vector.load %arg23[%c0_71, %c0_72] : memref<32x64xbf16, #tpu.memory_space<vmem>>, vector<32x64xbf16>
    %cst_73 = arith.constant dense<0.000000e+00> : vector<8x64xf32>
    %207 = tpu.matmul %205, %206, %cst_73 {dimension_numbers = #tpu.dot_dimension_numbers<[1], [0], [0], [1], [0, 0, 1, 1], [], []>} : vector<8x32xbf16>, vector<32x64xbf16>, vector<8x64xf32> -> vector<8x64xf32>
    %c0_74 = arith.constant 0 : index
    %c0_75 = arith.constant 0 : index
    %208 = vector.load %arg24[%c0_74, %c0_75] : memref<1x64xf32, #tpu.memory_space<vmem>>, vector<1x64xf32>
    %209 = vector.broadcast %208 : vector<1x64xf32> to vector<8x64xf32>
    %210 = arith.addf %207, %209 : vector<8x64xf32>
    %cst_76 = arith.constant 0.000000e+00 : f32
    %211 = vector.broadcast %cst_76 : f32 to vector<8x64xf32>
    %212 = arith.maximumf %210, %211 : vector<8x64xf32>
    %213 = arith.truncf %212 : vector<8x64xf32> to vector<8x64xbf16>
    %c0_77 = arith.constant 0 : index
    %c0_78 = arith.constant 0 : index
    %214 = vector.load %arg25[%c0_77, %c0_78] : memref<64x32xbf16, #tpu.memory_space<vmem>>, vector<64x32xbf16>
    %cst_79 = arith.constant dense<0.000000e+00> : vector<8x32xf32>
    %215 = tpu.matmul %213, %214, %cst_79 {dimension_numbers = #tpu.dot_dimension_numbers<[1], [0], [0], [1], [0, 0, 1, 1], [], []>} : vector<8x64xbf16>, vector<64x32xbf16>, vector<8x32xf32> -> vector<8x32xf32>
    %c0_80 = arith.constant 0 : index
    %c0_81 = arith.constant 0 : index
    %216 = vector.load %arg26[%c0_80, %c0_81] : memref<1x32xf32, #tpu.memory_space<vmem>>, vector<1x32xf32>
    %217 = vector.broadcast %216 : vector<1x32xf32> to vector<8x32xf32>
    %218 = arith.addf %215, %217 : vector<8x32xf32>
    %219 = arith.addf %204, %218 : vector<8x32xf32>
    %cst_82 = arith.constant dense<0.000000e+00> : vector<8xf32>
    %220 = vector.multi_reduction <add>, %219, %cst_82 [1] : vector<8x32xf32> to vector<8xf32>
    %221 = vector.shape_cast %220 : vector<8xf32> to vector<8x1xf32>
    %cst_83 = arith.constant 3.200000e+01 : f32
    %222 = vector.broadcast %cst_83 : f32 to vector<8x1xf32>
    %223 = arith.divf %221, %222 : vector<8x1xf32>
    %224 = vector.broadcast %223 : vector<8x1xf32> to vector<8x32xf32>
    %225 = arith.subf %219, %224 : vector<8x32xf32>
    %226 = arith.mulf %225, %225 : vector<8x32xf32>
    %cst_84 = arith.constant dense<0.000000e+00> : vector<8xf32>
    %227 = vector.multi_reduction <add>, %226, %cst_84 [1] : vector<8x32xf32> to vector<8xf32>
    %228 = vector.shape_cast %227 : vector<8xf32> to vector<8x1xf32>
    %cst_85 = arith.constant 3.200000e+01 : f32
    %229 = vector.broadcast %cst_85 : f32 to vector<8x1xf32>
    %230 = arith.divf %228, %229 : vector<8x1xf32>
    %cst_86 = arith.constant 9.99999974E-6 : f32
    %231 = vector.broadcast %cst_86 : f32 to vector<8x1xf32>
    %232 = arith.addf %230, %231 : vector<8x1xf32>
    %233 = math.rsqrt %232 : vector<8x1xf32>
    %234 = vector.broadcast %233 : vector<8x1xf32> to vector<8x32xf32>
    %235 = arith.mulf %225, %234 : vector<8x32xf32>
    %c0_87 = arith.constant 0 : index
    %c0_88 = arith.constant 0 : index
    %236 = vector.load %arg27[%c0_87, %c0_88] : memref<1x32xf32, #tpu.memory_space<vmem>>, vector<1x32xf32>
    %237 = vector.broadcast %236 : vector<1x32xf32> to vector<8x32xf32>
    %238 = arith.mulf %235, %237 : vector<8x32xf32>
    %c0_89 = arith.constant 0 : index
    %c0_90 = arith.constant 0 : index
    %239 = vector.load %arg28[%c0_89, %c0_90] : memref<1x32xf32, #tpu.memory_space<vmem>>, vector<1x32xf32>
    %240 = vector.broadcast %239 : vector<1x32xf32> to vector<8x32xf32>
    %241 = arith.addf %238, %240 : vector<8x32xf32>
    %c0_91 = arith.constant 0 : index
    %c0_92 = arith.constant 0 : index
    %c0_93 = arith.constant 0 : index
    %242 = vector.load %arg29[%c0_91, %c0_92, %c0_93] : memref<1x8x32xf32, #tpu.memory_space<vmem>>, vector<1x8x32xf32>
    %243 = vector.shape_cast %242 : vector<1x8x32xf32> to vector<8x32xf32>
    %244 = vector.shape_cast %241 : vector<8x32xf32> to vector<1x8x32xf32>
    tpu.vector_store %arg29[%c0_91, %c0_92, %c0_93], %244 {strides = array<i32>} : memref<1x8x32xf32, #tpu.memory_space<vmem>>, vector<1x8x32xf32>,
    return
  }
  func.func @transform_0(%arg0: i32) -> (i32, i32, i32) {
    %c0_i32 = arith.constant 0 : i32
    %c0_i32_0 = arith.constant 0 : i32
    %c0_i32_1 = arith.constant 0 : i32
    return %arg0, %c0_i32, %c0_i32_0 : i32, i32, i32
  }
  func.func @transform_1(%arg0: i32) -> (i32, i32, i32) {
    %c0_i32 = arith.constant 0 : i32
    %c0_i32_0 = arith.constant 0 : i32
    %c0_i32_1 = arith.constant 0 : i32
    return %arg0, %c0_i32, %c0_i32_0 : i32, i32, i32
  }
  func.func @transform_2(%arg0: i32) -> (i32, i32, i32) {
    %c0_i32 = arith.constant 0 : i32
    %c0_i32_0 = arith.constant 0 : i32
    %c0_i32_1 = arith.constant 0 : i32
    return %arg0, %c0_i32, %c0_i32_0 : i32, i32, i32
  }
  func.func @transform_3(%arg0: i32) -> (i32, i32, i32) {
    %c0_i32 = arith.constant 0 : i32
    %c0_i32_0 = arith.constant 0 : i32
    %c0_i32_1 = arith.constant 0 : i32
    return %arg0, %c0_i32, %c0_i32_0 : i32, i32, i32
  }
  func.func @transform_4(%arg0: i32) -> (i32, i32) {
    %c0_i32 = arith.constant 0 : i32
    %c0_i32_0 = arith.constant 0 : i32
    %c0_i32_1 = arith.constant 0 : i32
    return %c0_i32, %c0_i32_0 : i32, i32
  }
  func.func @transform_5(%arg0: i32) -> (i32, i32) {
    %c0_i32 = arith.constant 0 : i32
    %c0_i32_0 = arith.constant 0 : i32
    %c0_i32_1 = arith.constant 0 : i32
    return %c0_i32, %c0_i32_0 : i32, i32
  }
  func.func @transform_6(%arg0: i32) -> (i32, i32) {
    %c0_i32 = arith.constant 0 : i32
    %c0_i32_0 = arith.constant 0 : i32
    %c0_i32_1 = arith.constant 0 : i32
    return %c0_i32, %c0_i32_0 : i32, i32
  }
  func.func @transform_7(%arg0: i32) -> (i32, i32) {
    %c0_i32 = arith.constant 0 : i32
    %c0_i32_0 = arith.constant 0 : i32
    %c0_i32_1 = arith.constant 0 : i32
    return %c0_i32, %c0_i32_0 : i32, i32
  }
  func.func @transform_8(%arg0: i32) -> (i32, i32) {
    %c0_i32 = arith.constant 0 : i32
    %c0_i32_0 = arith.constant 0 : i32
    %c0_i32_1 = arith.constant 0 : i32
    return %c0_i32, %c0_i32_0 : i32, i32
  }
  func.func @transform_9(%arg0: i32) -> (i32, i32) {
    %c0_i32 = arith.constant 0 : i32
    %c0_i32_0 = arith.constant 0 : i32
    %c0_i32_1 = arith.constant 0 : i32
    return %c0_i32, %c0_i32_0 : i32, i32
  }
  func.func @transform_10(%arg0: i32) -> (i32, i32) {
    %c0_i32 = arith.constant 0 : i32
    %c0_i32_0 = arith.constant 0 : i32
    %c0_i32_1 = arith.constant 0 : i32
    return %c0_i32, %c0_i32_0 : i32, i32
  }
  func.func @transform_11(%arg0: i32) -> (i32, i32) {
    %c0_i32 = arith.constant 0 : i32
    %c0_i32_0 = arith.constant 0 : i32
    %c0_i32_1 = arith.constant 0 : i32
    return %c0_i32, %c0_i32_0 : i32, i32
  }
  func.func @transform_12(%arg0: i32) -> (i32, i32) {
    %c0_i32 = arith.constant 0 : i32
    %c0_i32_0 = arith.constant 0 : i32
    %c0_i32_1 = arith.constant 0 : i32
    return %c0_i32, %c0_i32_0 : i32, i32
  }
  func.func @transform_13(%arg0: i32) -> (i32, i32) {
    %c0_i32 = arith.constant 0 : i32
    %c0_i32_0 = arith.constant 0 : i32
    %c0_i32_1 = arith.constant 0 : i32
    return %c0_i32, %c0_i32_0 : i32, i32
  }
  func.func @transform_14(%arg0: i32) -> (i32, i32) {
    %c0_i32 = arith.constant 0 : i32
    %c0_i32_0 = arith.constant 0 : i32
    %c0_i32_1 = arith.constant 0 : i32
    return %c0_i32, %c0_i32_0 : i32, i32
  }
  func.func @transform_15(%arg0: i32) -> (i32, i32) {
    %c0_i32 = arith.constant 0 : i32
    %c0_i32_0 = arith.constant 0 : i32
    %c0_i32_1 = arith.constant 0 : i32
    return %c0_i32, %c0_i32_0 : i32, i32
  }
  func.func @transform_16(%arg0: i32) -> (i32, i32) {
    %c0_i32 = arith.constant 0 : i32
    %c0_i32_0 = arith.constant 0 : i32
    %c0_i32_1 = arith.constant 0 : i32
    return %c0_i32, %c0_i32_0 : i32, i32
  }
  func.func @transform_17(%arg0: i32) -> (i32, i32) {
    %c0_i32 = arith.constant 0 : i32
    %c0_i32_0 = arith.constant 0 : i32
    %c0_i32_1 = arith.constant 0 : i32
    return %c0_i32, %c0_i32_0 : i32, i32
  }
  func.func @transform_18(%arg0: i32) -> (i32, i32) {
    %c0_i32 = arith.constant 0 : i32
    %c0_i32_0 = arith.constant 0 : i32
    %c0_i32_1 = arith.constant 0 : i32
    return %c0_i32, %c0_i32_0 : i32, i32
  }
  func.func @transform_19(%arg0: i32) -> (i32, i32) {
    %c0_i32 = arith.constant 0 : i32
    %c0_i32_0 = arith.constant 0 : i32
    %c0_i32_1 = arith.constant 0 : i32
    return %c0_i32, %c0_i32_0 : i32, i32
  }
  func.func @transform_20(%arg0: i32) -> (i32, i32) {
    %c0_i32 = arith.constant 0 : i32
    %c0_i32_0 = arith.constant 0 : i32
    %c0_i32_1 = arith.constant 0 : i32
    return %c0_i32, %c0_i32_0 : i32, i32
  }
  func.func @transform_21(%arg0: i32) -> (i32, i32) {
    %c0_i32 = arith.constant 0 : i32
    %c0_i32_0 = arith.constant 0 : i32
    %c0_i32_1 = arith.constant 0 : i32
    return %c0_i32, %c0_i32_0 : i32, i32
  }
  func.func @transform_22(%arg0: i32) -> (i32, i32) {
    %c0_i32 = arith.constant 0 : i32
    %c0_i32_0 = arith.constant 0 : i32
    %c0_i32_1 = arith.constant 0 : i32
    return %c0_i32, %c0_i32_0 : i32, i32
  }
  func.func @transform_23(%arg0: i32) -> (i32, i32) {
    %c0_i32 = arith.constant 0 : i32
    %c0_i32_0 = arith.constant 0 : i32
    %c0_i32_1 = arith.constant 0 : i32
    return %c0_i32, %c0_i32_0 : i32, i32
  }
  func.func @transform_24(%arg0: i32) -> (i32, i32) {
    %c0_i32 = arith.constant 0 : i32
    %c0_i32_0 = arith.constant 0 : i32
    %c0_i32_1 = arith.constant 0 : i32
    return %c0_i32, %c0_i32_0 : i32, i32
  }
  func.func @transform_25(%arg0: i32) -> (i32, i32) {
    %c0_i32 = arith.constant 0 : i32
    %c0_i32_0 = arith.constant 0 : i32
    %c0_i32_1 = arith.constant 0 : i32
    return %c0_i32, %c0_i32_0 : i32, i32
  }
  func.func @transform_26(%arg0: i32) -> (i32, i32) {
    %c0_i32 = arith.constant 0 : i32
    %c0_i32_0 = arith.constant 0 : i32
    %c0_i32_1 = arith.constant 0 : i32
    return %c0_i32, %c0_i32_0 : i32, i32
  }
  func.func @transform_27(%arg0: i32) -> (i32, i32) {
    %c0_i32 = arith.constant 0 : i32
    %c0_i32_0 = arith.constant 0 : i32
    %c0_i32_1 = arith.constant 0 : i32
    return %c0_i32, %c0_i32_0 : i32, i32
  }
  func.func @transform_28(%arg0: i32) -> (i32, i32, i32) {
    %c0_i32 = arith.constant 0 : i32
    %c0_i32_0 = arith.constant 0 : i32
    %c0_i32_1 = arith.constant 0 : i32
    return %arg0, %c0_i32, %c0_i32_0 : i32, i32, i32
  }
}

</mosaic_0001>

<bundles_post_ra>
// kernel: tpu_custom_call.1
= control target key start
LH: loop header
LB: loop body
LE: loop exit
PB: predicated region body
PF: predicated region fallthrough
CT: control target
= control target key end

     0   :  { %s5080_s0 = inlined_call_operand.vmem [shape: f32[2,8,32], index: 0, kind: input, shape index: {}]   ;;  %s5081_s1 = inlined_call_operand.hbm [shape: f32[2,8,32], index: 1, kind: input, shape index: {}]   ;;  %s5082_s2 = inlined_call_operand.vmem [shape: f32[2,16,32], index: 2, kind: input, shape index: {}]   ;;  %s5083_s3 = inlined_call_operand.hbm [shape: f32[2,16,32], index: 3, kind: input, shape index: {}]   ;;  %s5084_s4 = inlined_call_operand.hbm [shape: bf16[32,64], index: 4, kind: input, shape index: {}]   ;;  %s5085_s5 = inlined_call_operand.hbm [shape: f32[1,64], index: 5, kind: input, shape index: {}]   ;;  %s5086_s6 = inlined_call_operand.hbm [shape: bf16[32,32], index: 6, kind: input, shape index: {}]   ;;  %s5087_s7 = inlined_call_operand.hbm [shape: f32[1,32], index: 7, kind: input, shape index: {}]   ;;  %s5088_s8 = inlined_call_operand.hbm [shape: bf16[32,32], index: 8, kind: input, shape index: {}]   ;;  %s5089_s9 = inlined_call_operand.hbm [shape: f32[1,32], index: 9, kind: input, shape index: {}]   ;;  %s5090_s10 = inlined_call_operand.vmem [shape: bf16[32,32], index: 10, kind: input, shape index: {}]   ;;  %s5091_s11 = inlined_call_operand.hbm [shape: f32[1,32], index: 11, kind: input, shape index: {}]   ;;  %s5092_s12 = inlined_call_operand.hbm [shape: bf16[32,32], index: 12, kind: input, shape index: {}]   ;;  %s5093_s13 = inlined_call_operand.hbm [shape: f32[1,32], index: 13, kind: input, shape index: {}]   ;;  %s5094_s14 = inlined_call_operand.vmem [shape: bf16[32,32], index: 14, kind: input, shape index: {}]   ;;  %s5095_s15 = inlined_call_operand.hbm [shape: f32[1,32], index: 15, kind: input, shape index: {}]   ;;  %s5096_s16 = inlined_call_operand.hbm [shape: bf16[32,32], index: 16, kind: input, shape index: {}]   ;;  %s5097_s17 = inlined_call_operand.hbm [shape: f32[1,32], index: 17, kind: input, shape index: {}]   ;;  %s5098_s18 = inlined_call_operand.vmem [shape: f32[1,32], index: 18, kind: input, shape index: {}]   ;;  %s5099_s19 = inlined_call_operand.vmem [shape: f32[1,32], index: 19, kind: input, shape index: {}]   ;;  %s5100_s20 = inlined_call_operand.vmem [shape: f32[1,32], index: 20, kind: input, shape index: {}]   ;;  %s5101_s21 = inlined_call_operand.vmem [shape: f32[1,32], index: 21, kind: input, shape index: {}]   ;;  %s5102_s22 = inlined_call_operand.vmem [shape: bf16[32,64], index: 22, kind: input, shape index: {}]   ;;  %s5103_s23 = inlined_call_operand.vmem [shape: f32[1,64], index: 23, kind: input, shape index: {}]   ;;  %s5104_s24 = inlined_call_operand.vmem [shape: bf16[64,32], index: 24, kind: input, shape index: {}]   ;;  %s5105_s25 = inlined_call_operand.vmem [shape: f32[1,32], index: 25, kind: input, shape index: {}]   ;;  %s5106_s26 = inlined_call_operand.vmem [shape: f32[1,32], index: 26, kind: input, shape index: {}]   ;;  %s5107_s27 = inlined_call_operand.vmem [shape: f32[1,32], index: 27, kind: input, shape index: {}]   ;;  %s5108_s28 = inlined_call_operand.hbm [shape: f32[2,8,32], index: 28, kind: output, shape index: {}]  }
   0x1   :  { %5139 = sst [smem:[#allocation36_spill]] %s5080_s0 }
   0x2   :  { %5140 = sst [smem:[#allocation37_spill]] %s5081_s1 }
   0x3   :  { %5141 = sst [smem:[#allocation38_spill]] %s5082_s2 }
   0x4   :  { %5142 = sst [smem:[#allocation39_spill]] %s5083_s3 }
   0x5   :  { %5143 = sst [smem:[#allocation40_spill]] %s5084_s4 }
   0x6   :  { %5144 = sst [smem:[#allocation41_spill]] %s5085_s5 }
   0x7   :  { %5145 = sst [smem:[#allocation42_spill]] %s5086_s6 }
   0x8   :  { %5146 = sst [smem:[#allocation43_spill]] %s5087_s7 }
   0x9   :  { %5147 = sst [smem:[#allocation44_spill]] %s5088_s8 }
   0xa   :  { %5148 = sst [smem:[#allocation45_spill]] %s5089_s9 }
   0xb   :  { %5149 = sst [smem:[#allocation46_spill]] %s5090_s10 }
   0xc   :  { %5150 = sst [smem:[#allocation47_spill]] %s5091_s11 }
   0xd   :  { %5151 = sst [smem:[#allocation48_spill]] %s5092_s12 }
   0xe   :  { %5152 = sst [smem:[#allocation49_spill]] %s5093_s13 }
   0xf   :  { %5153 = sst [smem:[#allocation50_spill]] %s5095_s15 }
  0x10   :  { %5154 = sst [smem:[#allocation51_spill]] %s5096_s16 }
  0x11   :  { %5155 = sst [smem:[#allocation52_spill]] %s5097_s17 }
  0x12   :  { %5156 = sst [smem:[#allocation53_spill]] %s5100_s20 }
  0x13   :  { %5157 = sst [smem:[#allocation54_spill]] %s5101_s21 }
  0x14   :  { %5158 = sst [smem:[#allocation55_spill]] %s5102_s22 }
  0x15   :  { %5159 = sst [smem:[#allocation56_spill]] %s5103_s23 }
  0x16   :  { %5160 = sst [smem:[#allocation57_spill]] %s5104_s24 }
  0x17   :  { %5161 = sst [smem:[#allocation58_spill]] %s5105_s25 }
  0x18   :  { %5162 = sst [smem:[#allocation59_spill]] %s5106_s26 }
  0x19   :  { %5163 = sst [smem:[#allocation60_spill]] %s5107_s27 }
  0x1a   :  { %5164 = sst [smem:[#allocation61_spill]] %s5108_s28 }
  0x1b   :  { %33 = vsyncpa [#allocation3], 0 }
  0x1c   :  { %35 = vsyncpa [#allocation3 + $0x1], 0 }
  0x1d   :  { %36 = vsyncpa [#allocation6], 0 }
  0x1e   :  { %38 = vsyncpa [#allocation6 + $0x1], 0 }
  0x1f   :  { %39 = vsyncpa [#allocation9], 0 }
  0x20   :  { %40 = vsyncpa [#allocation12], 0 }
  0x21   :  { %41 = vsyncpa [#allocation15], 0 }
  0x22   :  { %42 = vsyncpa [#allocation18], 0 }
  0x23   :  { %43 = vsyncpa [#allocation21], 0 }
  0x24   :  { %44 = vsyncpa [#allocation24], 0 }
  0x25   :  { %45 = vsyncpa [#allocation4], 0 }
  0x26   :  { %47 = vsyncpa [#allocation4 + $0x1], 0  ;;  %s4306_s8 = smov 0   ;;  %s4308_s5 = smov 0  }
  0x27   :  { %s4310_s9 = smov 0   ;;  %s4312_s30 = smov 0  }
  0x28 LB: > { %s4133_s3 = smov [#allocation7]   ;;  %s4327_s10 = sadd.s32 4294967295, %s4131_s30   ;;  %s4131_s30 = sphi %s4312_s30, %s5224_s30   ;;  %s4127_s9 = sphi %s4310_s9, %s5223_s9   ;;  %s4123_s5 = sphi %s4308_s5, %s5222_s5   ;;  %s4119_s8 = sphi %s4306_s8, %s5221_s8  }
  0x29   : > { %s704_s6 = sshll.u32 %s4133_s3, 4  ;;  %p3027_p0 = scmp.ge.s32.totalorder %s4131_s30, 1  ;;  %s4332_s6 = int_to_ptr.vmem [resolvable:$true] %s704_s6 }
  0x2a   : > { %p5128_p1 = scmp.eq.s32.totalorder %s4327_s10, 0  ;;  %p692_p2 = scmp.lt.s32.totalorder %s4131_s30, 3 }
  0x2b   : > { %s4134_s11 = smov [#allocation8]   ;;  %s4135_s7 = smov [#allocation11]  }
  0x2c   : > { %p4334_p3 = pnand %p3027_p0, %p692_p2  ;;  %s718_s29 = sshll.u32 %s4134_s11, 4  ;;  %s4347_s29 = int_to_ptr.vmem [resolvable:$true] %s718_s29 }
  0x2d   : > { %s742_s12 = sshll.u32 %s4135_s7, 4  ;;  %s5167_s3 = sld [smem:[#allocation40_spill]]  ;;  %s4349_s12 = int_to_ptr.vmem [resolvable:$true] %s742_s12 }
  0x2e   : > { %s5165_s0 = scalar_select %p4334_p3, 1, 0 }
  0x2f   : > { %p3418_p5 = pneg %p4334_p3 }
  0x31   : > { %p4343_p6 = pnand %p3418_p5, %p5128_p1 }
  0x33   : > { %s3637_s28 = scalar_lea.hbm %s5167_s3, 256  ;;  %p4359_p8 = pneg %p4343_p6 }
  0x34   : > { %p3638_p7 = scmp.ne.s32.totalorder %s5167_s3, %s3637_s28  ;;  %p3644_p11 = scmp.lt.u32.totalorder %s3637_s28, %s5167_s3 }
  0x36   : > { %p3640_p9 = pnand %p4359_p8, %p3638_p7 }
  0x38   : > { %p3641_p10 = pneg %p3640_p9 }
  0x3a   : > { %p3646_p12 = pnand %p3644_p11, %p3641_p10 }
  0x3c   : > { %3649 = shalt.err (!%p3646_p12)
}
  0x3d   : > { %s3650_s26 = scalar_lea.vmem %s4332_s6, 256  ;;  %p3658_p5 = scmp.lt.s32.totalorder %s4332_s6, %s4332_s6 }
  0x3e   : > { %p3651_p13 = scmp.ne.s32.totalorder %s4332_s6, %s3650_s26  ;;  %p3659_p4 = scmp.lt.s32.totalorder %s3650_s26, %s3650_s26 }
  0x40   : > { %p3653_p0 = pnand %p3651_p13, %p4359_p8  ;;  %p3660_p7 = por %p3659_p4, %p3658_p5 }
  0x42   : > { %p3654_p2 = pneg %p3653_p0 }
  0x44   : > { %p3661_p9 = pnand %p3660_p7, %p3654_p2 }
  0x46   : > { %3664 = shalt.err (!%p3661_p9)
}
  0x47   : > { %s5123_s27 = smov 64   ;;  %s5125_s25 = smov 4  }
  0x48   : > { %3421 = dma.hbm_to_vmem [thread:$0]  (!%p4343_p6), %s5167_s3, 256, %s4332_s6, [#allocation6], %s5123_s27, %s5123_s27, %s5125_s25  }
  0x49   : > { %s5169_s23 = sld [smem:[#allocation41_spill]] }
  0x4f   : > { %s3665_s26 = scalar_lea.hbm %s5169_s23, 16 }
  0x50   : > { %p3666_p4 = scmp.ne.s32.totalorder %s5169_s23, %s3665_s26  ;;  %p3672_p12 = scmp.lt.u32.totalorder %s3665_s26, %s5169_s23 }
  0x52   : > { %p3668_p10 = pnand %p3666_p4, %p4359_p8 }
  0x54   : > { %p3669_p11 = pneg %p3668_p10 }
  0x56   : > { %p3674_p13 = pnand %p3672_p12, %p3669_p11 }
  0x58   : > { %3677 = shalt.err (!%p3674_p13)
}
  0x59   : > { %s3678_s6 = scalar_lea.vmem %s4347_s29, 16  ;;  %s3685_s20 = scalar_lea.vmem %s4347_s29, 32 }
  0x5a   : > { %p3679_p0 = scmp.ne.s32.totalorder %s4347_s29, %s3678_s6  ;;  %p3686_p7 = scmp.lt.s32.totalorder %s4347_s29, %s4347_s29 }
  0x5b   : > { %p3687_p9 = scmp.lt.s32.totalorder %s3685_s20, %s3678_s6 }
  0x5c   : > { %p3681_p2 = pnand %p3679_p0, %p4359_p8 }
  0x5d   : > { %p3688_p4 = por %p3687_p9, %p3686_p7 }
  0x5e   : > { %p3682_p5 = pneg %p3681_p2 }
  0x60   : > { %p3689_p10 = pnand %p3688_p4, %p3682_p5 }
  0x62   : > { %3692 = shalt.err (!%p3689_p10)
}
  0x63   : > { %3424 = dma.hbm_to_vmem [thread:$0]  (!%p4343_p6), %s5169_s23, 16, %s4347_s29, [#allocation9]  }
  0x64   : > { %s5170_s1 = sld [smem:[#allocation43_spill]] }
  0x6a   : > { %s3693_s4 = scalar_lea.hbm %s5170_s1, 16 }
  0x6b   : > { %p3694_p11 = scmp.ne.s32.totalorder %s5170_s1, %s3693_s4  ;;  %p3700_p0 = scmp.lt.u32.totalorder %s3693_s4, %s5170_s1 }
  0x6d   : > { %p3696_p12 = pnand %p3694_p11, %p4359_p8 }
  0x6f   : > { %p3697_p13 = pneg %p3696_p12 }
  0x71   : > { %p3702_p2 = pnand %p3700_p0, %p3697_p13 }
  0x73   : > { %3705 = shalt.err (!%p3702_p2)
}
  0x74   : > { %s3706_s29 = scalar_lea.vmem %s4349_s12, 16  ;;  %s3713_s21 = scalar_lea.vmem %s4349_s12, 32 }
  0x75   : > { %p3707_p5 = scmp.ne.s32.totalorder %s4349_s12, %s3706_s29  ;;  %p3714_p4 = scmp.lt.s32.totalorder %s4349_s12, %s4349_s12 }
  0x76   : > { %p3715_p10 = scmp.lt.s32.totalorder %s3713_s21, %s3706_s29 }
  0x77   : > { %p3709_p7 = pnand %p3707_p5, %p4359_p8 }
  0x78   : > { %p3716_p11 = por %p3715_p10, %p3714_p4 }
  0x79   : > { %p3710_p9 = pneg %p3709_p7 }
  0x7b   : > { %p3717_p12 = pnand %p3716_p11, %p3710_p9 }
  0x7d   : > { %3720 = shalt.err (!%p3717_p12)
}
  0x7e   : > { %3430 = dma.hbm_to_vmem [thread:$0]  (!%p4343_p6), %s5170_s1, 16, %s4349_s12, [#allocation12]  }
  0x7f   : > { %s4138_s28 = smov [#allocation14]   ;;  %s4139_s7 = smov [#allocation17]  }
  0x80   : > { %s766_s4 = sshll.u32 %s4138_s28, 4  ;;  %s790_s26 = sshll.u32 %s4139_s7, 4  ;;  %s767_s4 = int_to_ptr.vmem [resolvable:$true] %s766_s4  ;;  %s791_s26 = int_to_ptr.vmem [resolvable:$true] %s790_s26 }
  0x81   : > { %s5171_s27 = sld [smem:[#allocation45_spill]] }
  0x87   : > { %s3721_s29 = scalar_lea.hbm %s5171_s27, 16 }
  0x88   : > { %p3722_p13 = scmp.ne.s32.totalorder %s5171_s27, %s3721_s29  ;;  %p3728_p5 = scmp.lt.u32.totalorder %s3721_s29, %s5171_s27 }
  0x8a   : > { %p3724_p0 = pnand %p3722_p13, %p4359_p8 }
  0x8c   : > { %p3725_p2 = pneg %p3724_p0 }
  0x8e   : > { %p3730_p7 = pnand %p3728_p5, %p3725_p2 }
  0x90   : > { %3733 = shalt.err (!%p3730_p7)
}
  0x91   : > { %s3734_s12 = scalar_lea.vmem %s767_s4, 16  ;;  %s3741_s24 = scalar_lea.vmem %s767_s4, 32 }
  0x92   : > { %p3735_p9 = scmp.ne.s32.totalorder %s767_s4, %s3734_s12  ;;  %p3742_p11 = scmp.lt.s32.totalorder %s767_s4, %s767_s4 }
  0x93   : > { %p3743_p12 = scmp.lt.s32.totalorder %s3741_s24, %s3734_s12 }
  0x94   : > { %p3737_p4 = pnand %p3735_p9, %p4359_p8 }
  0x95   : > { %p3744_p1 = por %p3743_p12, %p3742_p11 }
  0x96   : > { %p3738_p10 = pneg %p3737_p4 }
  0x98   : > { %p3745_p3 = pnand %p3744_p1, %p3738_p10 }
  0x9a   : > { %3748 = shalt.err (!%p3745_p3)
}
  0x9b   : > { %3436 = dma.hbm_to_vmem [thread:$0]  (!%p4343_p6), %s5171_s27, 16, %s767_s4, [#allocation15]  }
  0x9c   : > { %s5172_s6 = sld [smem:[#allocation48_spill]] }
  0xa2   : > { %s3749_s20 = scalar_lea.hbm %s5172_s6, 256 }
  0xa3   : > { %p3750_p13 = scmp.ne.s32.totalorder %s5172_s6, %s3749_s20  ;;  %p3756_p3 = scmp.lt.u32.totalorder %s3749_s20, %s5172_s6 }
  0xa5   : > { %p3752_p0 = pnand %p3750_p13, %p4359_p8 }
  0xa7   : > { %p3753_p1 = pneg %p3752_p0 }
  0xa9   : > { %p3758_p2 = pnand %p3756_p3, %p3753_p1 }
  0xab   : > { %3761 = shalt.err (!%p3758_p2)
}
  0xac   : > { %s3762_s24 = scalar_lea.vmem %s791_s26, 256  ;;  %p3770_p4 = scmp.lt.s32.totalorder %s791_s26, %s791_s26 }
  0xad   : > { %p3763_p5 = scmp.ne.s32.totalorder %s791_s26, %s3762_s24  ;;  %p3771_p10 = scmp.lt.s32.totalorder %s3762_s24, %s3762_s24 }
  0xaf   : > { %p3765_p7 = pnand %p3763_p5, %p4359_p8  ;;  %p3772_p11 = por %p3771_p10, %p3770_p4 }
  0xb1   : > { %p3766_p9 = pneg %p3765_p7 }
  0xb3   : > { %p3773_p12 = pnand %p3772_p11, %p3766_p9 }
  0xb5   : > { %3776 = shalt.err (!%p3773_p12)
}
  0xb6   : > { %s5173_s4 = smov 4   ;;  %s5174_s25 = smov 64  }
  0xb7   : > { %3442 = dma.hbm_to_vmem [thread:$0]  (!%p4343_p6), %s5172_s6, 256, %s791_s26, [#allocation18], %s5174_s25, %s5174_s25, %s5173_s4  }
  0xb8   : > { %s4140_s7 = smov [#allocation20]   ;;  %s4141_s29 = smov [#allocation10]  }
  0xb9   : > { %s818_s20 = sshll.u32 %s4140_s7, 4  ;;  %s728_s21 = sshll.u32 %s4141_s29, 4  ;;  %s819_s20 = int_to_ptr.vmem [resolvable:$true] %s818_s20  ;;  %s729_s21 = int_to_ptr.vmem [resolvable:$true] %s728_s21 }
  0xba   : > { %s5175_s15 = sld [smem:[#allocation50_spill]] }
  0xc0   : > { %s3777_s24 = scalar_lea.hbm %s5175_s15, 16 }
  0xc1   : > { %p3778_p13 = scmp.ne.s32.totalorder %s5175_s15, %s3777_s24  ;;  %p3784_p3 = scmp.lt.u32.totalorder %s3777_s24, %s5175_s15 }
  0xc3   : > { %p3780_p0 = pnand %p3778_p13, %p4359_p8 }
  0xc5   : > { %p3781_p1 = pneg %p3780_p0 }
  0xc7   : > { %p3786_p2 = pnand %p3784_p3, %p3781_p1 }
  0xc9   : > { %3789 = shalt.err (!%p3786_p2)
}
  0xca   : > { %s3790_s26 = scalar_lea.vmem %s819_s20, 16  ;;  %s3797_s3 = scalar_lea.vmem %s819_s20, 32 }
  0xcb   : > { %p3791_p5 = scmp.ne.s32.totalorder %s819_s20, %s3790_s26  ;;  %p3798_p4 = scmp.lt.s32.totalorder %s819_s20, %s819_s20 }
  0xcc   : > { %p3799_p10 = scmp.lt.s32.totalorder %s3797_s3, %s3790_s26 }
  0xcd   : > { %p3793_p7 = pnand %p3791_p5, %p4359_p8 }
  0xce   : > { %p3800_p11 = por %p3799_p10, %p3798_p4 }
  0xcf   : > { %p3794_p9 = pneg %p3793_p7 }
  0xd1   : > { %p3801_p12 = pnand %p3800_p11, %p3794_p9 }
  0xd3   : > { %3804 = shalt.err (!%p3801_p12)
}
  0xd4   : > { %3448 = dma.hbm_to_vmem [thread:$0]  (!%p4343_p6), %s5175_s15, 16, %s819_s20, [#allocation21]  }
  0xd5   : > { %s5176_s29 = sld [smem:[#allocation42_spill]] }
  0xdb   : > { %s3805_s22 = scalar_lea.hbm %s5176_s29, 256 }
  0xdc   : > { %p3806_p13 = scmp.ne.s32.totalorder %s5176_s29, %s3805_s22  ;;  %p3812_p3 = scmp.lt.u32.totalorder %s3805_s22, %s5176_s29 }
  0xde   : > { %p3808_p0 = pnand %p3806_p13, %p4359_p8 }
  0xe0   : > { %p3809_p1 = pneg %p3808_p0 }
  0xe2   : > { %p3814_p2 = pnand %p3812_p3, %p3809_p1 }
  0xe4   : > { %3817 = shalt.err (!%p3814_p2)
}
  0xe5   : > { %s3818_s3 = scalar_lea.vmem %s729_s21, 256  ;;  %p3826_p4 = scmp.lt.s32.totalorder %s729_s21, %s729_s21 }
  0xe6   : > { %p3819_p5 = scmp.ne.s32.totalorder %s729_s21, %s3818_s3  ;;  %p3827_p10 = scmp.lt.s32.totalorder %s3818_s3, %s3818_s3 }
  0xe8   : > { %p3821_p7 = pnand %p3819_p5, %p4359_p8  ;;  %p3828_p11 = por %p3827_p10, %p3826_p4 }
  0xea   : > { %p3822_p9 = pneg %p3821_p7 }
  0xec   : > { %p3829_p12 = pnand %p3828_p11, %p3822_p9 }
  0xee   : > { %3832 = shalt.err (!%p3829_p12)
}
  0xef   : > { %3427 = dma.hbm_to_vmem [thread:$0]  (!%p4343_p6), %s5176_s29, 256, %s729_s21, [#allocation9], %s5174_s25, %s5174_s25, %s5173_s4  }
  0xf0   : > { %s4142_s1 = smov [#allocation13]   ;;  %s4143_s7 = smov [#allocation16]  }
  0xf1   : > { %s752_s27 = sshll.u32 %s4142_s1, 4  ;;  %s780_s22 = sshll.u32 %s4143_s7, 4  ;;  %s753_s27 = int_to_ptr.vmem [resolvable:$true] %s752_s27  ;;  %s781_s22 = int_to_ptr.vmem [resolvable:$true] %s780_s22 }
  0xf2   : > { %s5177_s28 = sld [smem:[#allocation44_spill]] }
  0xf8   : > { %s3833_s26 = scalar_lea.hbm %s5177_s28, 256 }
  0xf9   : > { %p3834_p13 = scmp.ne.s32.totalorder %s5177_s28, %s3833_s26  ;;  %p3840_p3 = scmp.lt.u32.totalorder %s3833_s26, %s5177_s28 }
  0xfb   : > { %p3836_p0 = pnand %p3834_p13, %p4359_p8 }
  0xfd   : > { %p3837_p1 = pneg %p3836_p0 }
  0xff   : > { %p3842_p2 = pnand %p3840_p3, %p3837_p1 }
 0x101   : > { %3845 = shalt.err (!%p3842_p2)
}
 0x102   : > { %s3846_s21 = scalar_lea.vmem %s753_s27, 256  ;;  %p3854_p4 = scmp.lt.s32.totalorder %s753_s27, %s753_s27 }
 0x103   : > { %p3847_p5 = scmp.ne.s32.totalorder %s753_s27, %s3846_s21  ;;  %p3855_p10 = scmp.lt.s32.totalorder %s3846_s21, %s3846_s21 }
 0x105   : > { %p3849_p7 = pnand %p3847_p5, %p4359_p8  ;;  %p3856_p11 = por %p3855_p10, %p3854_p4 }
 0x107   : > { %p3850_p9 = pneg %p3849_p7 }
 0x109   : > { %p3857_p12 = pnand %p3856_p11, %p3850_p9 }
 0x10b   : > { %3860 = shalt.err (!%p3857_p12)
}
 0x10c   : > { %3433 = dma.hbm_to_vmem [thread:$0]  (!%p4343_p6), %s5177_s28, 256, %s753_s27, [#allocation12], %s5174_s25, %s5174_s25, %s5173_s4  }
 0x10d   : > { %s5178_s7 = sld [smem:[#allocation47_spill]] }
 0x113   : > { %s3861_s12 = scalar_lea.hbm %s5178_s7, 16 }
 0x114   : > { %p3862_p13 = scmp.ne.s32.totalorder %s5178_s7, %s3861_s12  ;;  %p3868_p3 = scmp.lt.u32.totalorder %s3861_s12, %s5178_s7 }
 0x116   : > { %p3864_p0 = pnand %p3862_p13, %p4359_p8 }
 0x118   : > { %p3865_p1 = pneg %p3864_p0 }
 0x11a   : > { %p3870_p2 = pnand %p3868_p3, %p3865_p1 }
 0x11c   : > { %3873 = shalt.err (!%p3870_p2)
}
 0x11d   : > { %s3874_s21 = scalar_lea.vmem %s781_s22, 16  ;;  %s3881_s27 = scalar_lea.vmem %s781_s22, 32 }
 0x11e   : > { %p3875_p5 = scmp.ne.s32.totalorder %s781_s22, %s3874_s21  ;;  %p3882_p4 = scmp.lt.s32.totalorder %s781_s22, %s781_s22 }
 0x11f   : > { %p3883_p10 = scmp.lt.s32.totalorder %s3881_s27, %s3874_s21 }
 0x120   : > { %p3877_p7 = pnand %p3875_p5, %p4359_p8 }
 0x121   : > { %p3884_p11 = por %p3883_p10, %p3882_p4 }
 0x122   : > { %p3878_p9 = pneg %p3877_p7 }
 0x124   : > { %p3885_p12 = pnand %p3884_p11, %p3878_p9 }
 0x126   : > { %3888 = shalt.err (!%p3885_p12)
}
 0x127   : > { %3439 = dma.hbm_to_vmem [thread:$0]  (!%p4343_p6), %s5178_s7, 16, %s781_s22, [#allocation15]  }
 0x128   : > { %s4144_s23 = smov [#allocation19]   ;;  %s4145_s12 = smov [#allocation22]  }
 0x129   : > { %s804_s1 = sshll.u32 %s4144_s23, 4  ;;  %s828_s24 = sshll.u32 %s4145_s12, 4  ;;  %s805_s1 = int_to_ptr.vmem [resolvable:$true] %s804_s1  ;;  %s829_s24 = int_to_ptr.vmem [resolvable:$true] %s828_s24 }
 0x12a   : > { %s5179_s13 = sld [smem:[#allocation49_spill]] }
 0x130   : > { %s3889_s20 = scalar_lea.hbm %s5179_s13, 16 }
 0x131   : > { %p3890_p13 = scmp.ne.s32.totalorder %s5179_s13, %s3889_s20  ;;  %p3896_p3 = scmp.lt.u32.totalorder %s3889_s20, %s5179_s13 }
 0x133   : > { %p3892_p0 = pnand %p3890_p13, %p4359_p8 }
 0x135   : > { %p3893_p1 = pneg %p3892_p0 }
 0x137   : > { %p3898_p2 = pnand %p3896_p3, %p3893_p1 }
 0x139   : > { %3901 = shalt.err (!%p3898_p2)
}
 0x13a   : > { %s3902_s22 = scalar_lea.vmem %s805_s1, 16  ;;  %s3909_s6 = scalar_lea.vmem %s805_s1, 32 }
 0x13b   : > { %p3903_p5 = scmp.ne.s32.totalorder %s805_s1, %s3902_s22  ;;  %p3910_p4 = scmp.lt.s32.totalorder %s805_s1, %s805_s1 }
 0x13c   : > { %p3911_p10 = scmp.lt.s32.totalorder %s3909_s6, %s3902_s22 }
 0x13d   : > { %p3905_p7 = pnand %p3903_p5, %p4359_p8 }
 0x13e   : > { %p3912_p11 = por %p3911_p10, %p3910_p4 }
 0x13f   : > { %p3906_p9 = pneg %p3905_p7 }
 0x141   : > { %p3913_p12 = pnand %p3912_p11, %p3906_p9 }
 0x143   : > { %3916 = shalt.err (!%p3913_p12)
}
 0x144   : > { %3445 = dma.hbm_to_vmem [thread:$0]  (!%p4343_p6), %s5179_s13, 16, %s805_s1, [#allocation18]  }
 0x145   : > { %s5180_s16 = sld [smem:[#allocation51_spill]] }
 0x14b   : > { %s3917_s3 = scalar_lea.hbm %s5180_s16, 256 }
 0x14c   : > { %p3918_p13 = scmp.ne.s32.totalorder %s5180_s16, %s3917_s3  ;;  %p3924_p3 = scmp.lt.u32.totalorder %s3917_s3, %s5180_s16 }
 0x14e   : > { %p3920_p0 = pnand %p3918_p13, %p4359_p8 }
 0x150   : > { %p3921_p1 = pneg %p3920_p0 }
 0x152   : > { %p3926_p2 = pnand %p3924_p3, %p3921_p1 }
 0x154   : > { %3929 = shalt.err (!%p3926_p2)
}
 0x155   : > { %s3930_s22 = scalar_lea.vmem %s829_s24, 256  ;;  %p3938_p4 = scmp.lt.s32.totalorder %s829_s24, %s829_s24 }
 0x156   : > { %p3931_p5 = scmp.ne.s32.totalorder %s829_s24, %s3930_s22  ;;  %p3939_p10 = scmp.lt.s32.totalorder %s3930_s22, %s3930_s22 }
 0x158   : > { %p3933_p7 = pnand %p3931_p5, %p4359_p8  ;;  %p3940_p11 = por %p3939_p10, %p3938_p4 }
 0x15a   : > { %p3934_p9 = pneg %p3933_p7 }
 0x15c   : > { %p3941_p12 = pnand %p3940_p11, %p3934_p9 }
 0x15e   : > { %3944 = shalt.err (!%p3941_p12)
}
 0x15f   : > { %3451 = dma.hbm_to_vmem [thread:$0]  (!%p4343_p6), %s5180_s16, 256, %s829_s24, [#allocation21], %s5174_s25, %s5174_s25, %s5173_s4  }
 0x160   : > { %s4146_s23 = smov [#allocation23]   ;;  %s5181_s17 = sld [smem:[#allocation52_spill]] }
 0x161   : > { %s842_s12 = sshll.u32 %s4146_s23, 4  ;;  %s843_s12 = int_to_ptr.vmem [resolvable:$true] %s842_s12 }
 0x166   : > { %s3945_s3 = scalar_lea.hbm %s5181_s17, 16 }
 0x167   : > { %p3946_p13 = scmp.ne.s32.totalorder %s5181_s17, %s3945_s3  ;;  %p3952_p3 = scmp.lt.u32.totalorder %s3945_s3, %s5181_s17 }
 0x169   : > { %p3948_p0 = pnand %p3946_p13, %p4359_p8 }
 0x16b   : > { %p3949_p1 = pneg %p3948_p0 }
 0x16d   : > { %p3954_p2 = pnand %p3952_p3, %p3949_p1 }
 0x16f   : > { %3957 = shalt.err (!%p3954_p2)
}
 0x170   : > { %s3958_s4 = scalar_lea.vmem %s843_s12, 16  ;;  %s3965_s25 = scalar_lea.vmem %s843_s12, 32 }
 0x171   : > { %p3959_p5 = scmp.ne.s32.totalorder %s843_s12, %s3958_s4  ;;  %p3966_p4 = scmp.lt.s32.totalorder %s843_s12, %s843_s12 }
 0x172   : > { %p3967_p10 = scmp.lt.s32.totalorder %s3965_s25, %s3958_s4 }
 0x173   : > { %p3961_p7 = pnand %p3959_p5, %p4359_p8 }
 0x174   : > { %p3968_p11 = por %p3967_p10, %p3966_p4 }
 0x175   : > { %p3962_p9 = pneg %p3961_p7 }
 0x177   : > { %p3969_p12 = pnand %p3968_p11, %p3962_p9 }
 0x179   : > { %3972 = shalt.err (!%p3969_p12)
}
 0x17a   : > { %3454 = dma.hbm_to_vmem [thread:$0]  (!%p4343_p6), %s5181_s17, 16, %s843_s12, [#allocation24]  }
 0x17b   : > { %s3026_s11 = sadd.s32 4294967294, %s4131_s30   ;;  %s4607_s2 = sadd.s32 1, %s4131_s30  }
 0x17c   : > { %s83_s1 = ssub.s32 %s4131_s30, %s4607_s2  ;;  %s86_s6 = sadd.s32 1, %s4127_s9 }
 0x17d   : > { %p84_p8 = scmp.eq.s32.totalorder %s83_s1, 0  ;;  %p93_p13 = scmp.ne.s32.totalorder %s4127_s9, %s4123_s5 }
 0x17e   : > { %p94_p0 = scmp.eq.s32.totalorder %s4131_s30, 0  ;;  %p99_p1 = scmp.ne.s32.totalorder %s4123_s5, %s4119_s8 }
 0x17f   : > { %s4618_s23 = scalar_select %p84_p8, %s4127_s9, %s86_s6  }
 0x180   : > { %p4620_p3 = por %p94_p0, %p93_p13  ;;  %p5183_p2 = scmp.eq.s32.totalorder %s4327_s10, 0 }
 0x181   : > { %p679_p5 = scmp.eq.s32.totalorder %s4327_s10, 1  ;;  %p685_p7 = scmp.eq.s32.totalorder %s3026_s11, 1 }
 0x182   : > { %p4626_p6 = por %p5183_p2, %p99_p1  ;;  %p3478_p9 = scmp.lt.s32.totalorder %s4131_s30, 2 }
 0x183   : > { %s4633_s26 = sand.u32 1, %s4127_s9   ;;  %p4635_p4 = por %p679_p5, %p93_p13 }
 0x184   : > { %p4639_p10 = por %p685_p7, %p99_p1  ;;  %s3041_s21 = sshll.u32 %s4633_s26, 3 }
 0x185   : > { %s5185_s3 = scalar_select %p4635_p4, 1, 0 }
 0x186   : > { %s5186_s20 = scalar_select %p4639_p10, 1, 0 }
 0x187   : > { %s3042_s27 = sshll.u32 %s4131_s30, 7  ;;  %s5187_s25 = sld [smem:[#allocation37_spill]] }
 0x188   : > { %s894_s22 = scalar_lea.vmem [#allocation2], %s3041_s21  ;;  %p4654_p11 = pnand %p3478_p9, %p4620_p3 }
 0x189   : > { %s901_s11 = sshll.u32 %s894_s22, 4  ;;  %s3043_s6 = sshll.u32 %s4633_s26, 4  ;;  %s4650_s11 = int_to_ptr.vmem [resolvable:$true] %s901_s11 }
 0x18a   : > { %s891_s15 = scalar_lea.sflag [#allocation3], %s4633_s26  ;;  %p3975_p8 = pneg %p4654_p11 }
 0x18d   : > { %s4648_s24 = scalar_lea.hbm %s5187_s25, %s3042_s27  ;;  %s3978_s28 = scalar_lea.hbm %s5187_s25, 256 }
 0x18e   : > { %s3973_s27 = scalar_lea.hbm %s4648_s24, 128  ;;  %p3979_p1 = scmp.lt.u32.totalorder %s4648_s24, %s5187_s25 }
 0x18f   : > { %p3974_p12 = scmp.ne.s32.totalorder %s4648_s24, %s3973_s27  ;;  %p3980_p3 = scmp.lt.u32.totalorder %s3978_s28, %s3973_s27 }
 0x190   : > { %p3982_p5 = scmp.lt.u32.totalorder %s3973_s27, %s4648_s24 }
 0x191   : > { %p3976_p13 = pnand %p3975_p8, %p3974_p12  ;;  %p3981_p2 = por %p3980_p3, %p3979_p1 }
 0x193   : > { %p3977_p0 = pneg %p3976_p13  ;;  %p3983_p7 = por %p3982_p5, %p3981_p2 }
 0x195   : > { %p3984_p9 = pnand %p3983_p7, %p3977_p0 }
 0x197   : > { %3987 = shalt.err (!%p3984_p9)
}
 0x198   : > { %s3988_s7 = scalar_lea.vmem %s4650_s11, 128  ;;  %s4147_s21 = smov [#allocation2]  }
 0x199   : > { %p3989_p12 = scmp.ne.s32.totalorder %s4650_s11, %s3988_s7  ;;  %s3993_s4 = sshll.u32 %s4147_s21, 4  ;;  %s3994_s4 = int_to_ptr.vmem [resolvable:$false] %s3993_s4 }
 0x19a   : > { %s3995_s13 = scalar_lea.vmem %s3994_s4, 256  ;;  %p3996_p4 = scmp.lt.s32.totalorder %s4650_s11, %s3994_s4 }
 0x19b   : > { %p3991_p13 = pnand %p3989_p12, %p3975_p8  ;;  %p3997_p1 = scmp.lt.s32.totalorder %s3995_s13, %s3988_s7 }
 0x19d   : > { %p3992_p10 = pneg %p3991_p13  ;;  %p3998_p3 = por %p3997_p1, %p3996_p4 }
 0x19f   : > { %p3999_p2 = pnand %p3998_p3, %p3992_p10 }
 0x1a1   : > { %4002 = shalt.err (!%p3999_p2)
}
 0x1a2   : > { %3458 = dma.hbm_to_vmem [thread:$0]  (!%p4654_p11), %s4648_s24, 128, %s4650_s11, %s891_s15  }
 0x1a3   : > { %s920_s27 = scalar_lea.vmem [#allocation5], %s3043_s6  ;;  %s3129_s22 = sshll.u32 %s4131_s30, 8 }
 0x1a4   : > { %s927_s28 = sshll.u32 %s920_s27, 4  ;;  %s5189_s4 = sld [smem:[#allocation39_spill]]  ;;  %s4688_s28 = int_to_ptr.vmem [resolvable:$true] %s927_s28 }
 0x1a5   : > { %s5190_s16 = sand.u32 1, %s4131_s30  }
 0x1a6   : > { %s4698_s17 = scalar_lea.sflag [#allocation6], %s5190_s16 }
 0x1aa   : > { %s4694_s13 = scalar_lea.hbm %s5189_s4, %s3129_s22  ;;  %s4008_s11 = scalar_lea.hbm %s5189_s4, 512 }
 0x1ab   : > { %s4003_s25 = scalar_lea.hbm %s4694_s13, 256  ;;  %p4009_p5 = scmp.lt.u32.totalorder %s4694_s13, %s5189_s4 }
 0x1ac   : > { %p4004_p4 = scmp.ne.s32.totalorder %s4694_s13, %s4003_s25  ;;  %p4010_p7 = scmp.lt.u32.totalorder %s4008_s11, %s4003_s25 }
 0x1ad   : > { %p4012_p12 = scmp.lt.u32.totalorder %s4003_s25, %s4694_s13 }
 0x1ae   : > { %p4006_p10 = pnand %p4004_p4, %p3975_p8  ;;  %p4011_p9 = por %p4010_p7, %p4009_p5 }
 0x1b0   : > { %p4007_p0 = pneg %p4006_p10  ;;  %p4013_p13 = por %p4012_p12, %p4011_p9 }
 0x1b2   : > { %p4014_p1 = pnand %p4013_p13, %p4007_p0 }
 0x1b4   : > { %4017 = shalt.err (!%p4014_p1)
}
 0x1b5   : > { %s4018_s16 = scalar_lea.vmem %s4688_s28, 256  ;;  %s4148_s27 = smov [#allocation5]  }
 0x1b6   : > { %p4019_p3 = scmp.ne.s32.totalorder %s4688_s28, %s4018_s16  ;;  %s4023_s22 = sshll.u32 %s4148_s27, 4  ;;  %s4024_s22 = int_to_ptr.vmem [resolvable:$false] %s4023_s22 }
 0x1b7   : > { %s4025_s21 = scalar_lea.vmem %s4024_s22, 512  ;;  %p4026_p10 = scmp.lt.s32.totalorder %s4688_s28, %s4024_s22 }
 0x1b8   : > { %p4021_p2 = pnand %p4019_p3, %p3975_p8  ;;  %p4027_p5 = scmp.lt.s32.totalorder %s4025_s21, %s4018_s16 }
 0x1ba   : > { %p4022_p4 = pneg %p4021_p2  ;;  %p4028_p7 = por %p4027_p5, %p4026_p10 }
 0x1bc   : > { %p4029_p9 = pnand %p4028_p7, %p4022_p4 }
 0x1be   : > { %4032 = shalt.err (!%p4029_p9)
}
 0x1bf   : > { %s4149_s25 = smov 128   ;;  %s4150_s7 = smov 8  }
 0x1c0   : > { %3461 = dma.hbm_to_vmem [thread:$0]  (!%p4654_p11), %s4694_s13, 256, %s4688_s28, %s4698_s17, %s4149_s25, %s4149_s25, %s4150_s7  }
 0x1c1   : > { %p5191_p8 = scmp.ne.s32.totalorder %s5165_s0, 0 }
 0x1c2   : > { %s4727_s26 = sand.u32 (!%p5191_p8), 1, %s4123_s5  }
 0x1c3   : > { %939 = sbr.rel (%p5191_p8) target bundleno = 4530 (0x11b2), region = 132  ;;  %s3047_s24 = sshll.u32 (!%p5191_p8), %s4727_s26, 3 }
 0x1c4   : > { %s942_s11 = scalar_lea.sflag (!%p5191_p8), [#allocation3], %s4727_s26  ;;  %s4733_s6 = scalar_lea.vmem (!%p5191_p8), [#allocation2], %s3047_s24 }
 0x1ca   : > { %4078 = dma.done.wait (%p4626_p6), %s942_s11, 128  }
 0x1cb   : > { %4080 = vsyncadd (%p4626_p6), %s942_s11, 4294967168  ;;  %s950_s17 = sand.u32 1, %s4327_s10   ;;  %s3048_s0 = sshll.u32 %s4727_s26, 4 }
 0x1cc   : > { %s951_s1 = scalar_lea.sflag [#allocation6], %s950_s17  ;;  %s4741_s28 = scalar_lea.vmem [#allocation5], %s3048_s0 }
 0x1cd   : > { %4082 = dma.done.wait (%p4626_p6), %s951_s1, 256  }
 0x1ce   : > { %4084 = vsyncadd (%p4626_p6), %s951_s1, 4294967040  ;;  %p5192_p11 = scmp.eq.s32.totalorder %s4327_s10, 0 }
 0x1d0   : > { %4086 = dma.done.wait (%p5192_p11), [#allocation6], 256   ;;  %p5193_p0 = pmov %p5192_p11 }
 0x1d2   : > { %4088 = vsyncadd (%p5193_p0), [#allocation6], 4294967040  ;;  %p5194_p12 = pmov %p5193_p0 }
 0x1d3   : > { %p5195_p13 = pmov %p5193_p0 }
 0x1d4   : > { %4090 = dma.done.wait (%p5194_p12), [#allocation9], 272  }
 0x1d5   : > { %4092 = vsyncadd (%p5195_p13), [#allocation9], 4294967024  ;;  %p5196_p1 = pmov %p5193_p0 }
 0x1d6   : > { %p5197_p3 = pmov %p5193_p0 }
 0x1d7   : > { %4094 = dma.done.wait (%p5196_p1), [#allocation12], 272  }
 0x1d8   : > { %4096 = vsyncadd (%p5197_p3), [#allocation12], 4294967024  ;;  %p5198_p6 = pmov %p5193_p0 }
 0x1d9   : > { %p5199_p2 = pmov %p5193_p0 }
 0x1da   : > { %4098 = dma.done.wait (%p5198_p6), [#allocation15], 32  }
 0x1db   : > { %4100 = vsyncadd (%p5199_p2), [#allocation15], 4294967264  ;;  %p5200_p4 = pmov %p5193_p0 }
 0x1dc   : > { %p5201_p10 = pmov %p5193_p0 }
 0x1dd   : > { %4102 = dma.done.wait (%p5200_p4), [#allocation18], 272  }
 0x1de   : > { %4104 = vsyncadd (%p5201_p10), [#allocation18], 4294967024  ;;  %p5202_p5 = pmov %p5193_p0 }
 0x1df   : > { %p5203_p7 = pmov %p5193_p0 }
 0x1e0   : > { %4106 = dma.done.wait (%p5202_p5), [#allocation21], 272  }
 0x1e1   : > { %4108 = vsyncadd (%p5203_p7), [#allocation21], 4294967024  ;;  %p5204_p9 = pmov %p5193_p0 }
 0x1e2   : > { %p5205_p8 = pmov %p5193_p0 }
 0x1e3   : > { %4110 = dma.done.wait (%p5204_p9), [#allocation24], 16  }
 0x1e4   : > { %4112 = vsyncadd (%p5205_p8), [#allocation24], 4294967280  ;;  %p1089_p11 = scmp.lt.s32.totalorder %s4327_s10, 1  ;;  %v4151_v0 = vmov 0.0   ;;  %vm4152_vm0 = vmmov 0   ;;  %s5206_s27 = sld [smem:[#allocation36_spill]] }
 0x1e5   : > { %3192 = vmatprep.subr.bf16.mxu1 %v4151_v0  ;;  %3196 = vmatprep.mubr.msk.bf16.mxu1 %vm4152_vm0, %v4151_v0  ;;  %v3579_v1 = vld [vmem:[#allocation7] sm:$0xff]   ;;  %v3580_v2 = vld [vmem:[#allocation7 + $0x8] sm:$0xff]   ;;  %v4792_v4 = vld [vmem:[%s4733_s6] sm:$0xff]  ;;  %vm1130_vm1 = vcmask 261120   ;;  %s4153_s21 = smov 104   ;;  %s4154_s25 = smov 120  }
 0x1e6   : > { %s4780_s12 = scalar_select %p1089_p11, %s4327_s10, 1  ;;  %3208 = vmatprep.subr.bf16.mxu0 %v4151_v0  ;;  %3210 = vmatprep.mubr.msk.bf16.mxu0 %vm4152_vm0, %v4151_v0  ;;  %v3065_v7 = vld [vmem:[#allocation8] ss:$0 sm:$0xff]  ;;  %v3581_v12 = vld [vmem:[#allocation10] sm:$0xff]   ;;  %v3582_v14 = vld [vmem:[#allocation10 + $0x8] sm:$0xff]   ;;  %vm1272_vm2 = vcmask 64512  }
 0x1e7   : > { %3193 = vmatpush3.bf16.msra.mxu1 %v3579_v1  ;;  %s4155_s7 = smov 112   ;;  %s4156_s11 = smov 96   ;;  %v3069_v30 = vld [vmem:[#allocation11] ss:$0 sm:$0xff]  ;;  %vm1509_vm3 = vcmask 1043456   ;;  %vm1712_vm4 = vcmask 130048  }
 0x1e8   : > { %s3062_s13 = sshll.u32 %s4780_s12, 3  ;;  %3194 = vmatprep.subr.bf16.mxu1 %v4151_v0  ;;  %s4157_s6 = smov 8   ;;  %vm1714_vm5 = vcmask 195584   ;;  %vm2706_vm6 = vcmask 523264  }
 0x1e9   : > { %s4158_s17 = smov 16   ;;  %s4159_s0 = smov 24  }
 0x1ea   : > { %s1092_s22 = scalar_lea.vmem %s5206_s27, %s3062_s13  ;;  %s3130_s1 = sshll.u32 %s4780_s12, 4 }
 0x1eb   : > { %v4789_v3 = vld [vmem:[%s1092_s22] sm:$0xff]  ;;  %3195 = vmatpush3.bf16.msra.mxu1 %v3580_v2  ;;  %s5207_s16 = sld [smem:[#allocation38_spill]]  ;;  %s5210_s15 = sld [smem:[#allocation57_spill]] }
 0x1ec   : > { %v1105_v5 = vadd.f32 %v4792_v4, %v4789_v3  ;;  %3200 = vmatprep.subr.bf16.mxu1 %v4151_v0  ;;  %v1174_v16 = vpack.c.bf16 %v4789_v3, %v4789_v3  ;;  %s5213_s12 = sld [smem:[#allocation56_spill]]  ;;  %s5214_s13 = sld [smem:[#allocation58_spill]] }
 0x1ed   : > { %p5218_p12 = scmp.ne.s32.totalorder %s5185_s3, 0 }
 0x1ee   : > { %v1106_v6 = vpack.c.bf16 %v1105_v5, %v1105_v5 }
 0x1f0   : > { %3197 = vmatmul.mubr.msk.bf16.vlgmr.msra.gmra.mrb[0].mxu1 %vm1130_vm1, %v1106_v6 }
 0x1f1   : > { %3204 = vmatprep.mubr.msk.bf16.mxu1 %vm4152_vm0, %v4151_v0  ;;  %3201 = vmatpush3.bf16.msra.mxu1 %v3581_v12  ;;  %s1097_s27 = scalar_lea.vmem %s5207_s16, %s3130_s1  ;;  %s5211_s1 = sld [smem:[#allocation53_spill]] }
 0x1f2   : > { %3202 = vmatprep.subr.bf16.mxu1 %v4151_v0  ;;  %s3126_s16 = sshll.u32 %s4327_s10, 7  ;;  %s4160_s10 = smov [#allocation25]  }
 0x1f5   : > { %3203 = vmatpush3.bf16.msra.mxu1 %v3582_v14 }
 0x1f6   : > { %3214 = vmatprep.subr.bf16.mxu1 %v4151_v0 }
 0x1f8   : > { %3205 = vmatmul.mubr.msk.bf16.vlgmr.msra.gmra.mrb[4].mxu1 %vm1130_vm1, %v1174_v16 }
 0x1f9   : > { %3216 = vmatprep.mubr.msk.bf16.mxu1 %vm4152_vm0, %v4151_v0 }
 0x2c3   : > { %v1168_v8 = vpop.f32.mrb[0].mxu1 }
 0x2c4   : > { %v1169_v9 = vadd.f32 %v3065_v7, %v1168_v8  ;;  %v3198_v10 = vpop.f32.mrb[1].mxu1 }
 0x2c5   : > { %v1171_v11 = vpop.f32.mrb[2].mxu1 }
 0x2c6   : > { %1248 = vrot.lane.b32.xlu1 %v1169_v9, %s4153_s21  ;;  %1242 = vrot.lane.b32.xlu0 %v1169_v9, %s4154_s25  ;;  %v3199_v13 = vpop.f32.mrb[3].mxu1  ;;  %v1251_v15 = vpack.c.bf16 %v1169_v9, %v1169_v9 }
 0x2ca   : > { %1245 = vrot.lane.b32.xlu0 %v1169_v9, %s4155_s7  ;;  %1270 = vrot.lane.b32.xlu1 %v1251_v15, %s4156_s11 }
 0x2cb   : > { %v1235_v25 = vpop.f32.mrb[4].mxu1 }
 0x2cc   : > { %v3206_v26 = vpop.f32.mrb[5].mxu1  ;;  %v1236_v32 = vadd.f32 %v3069_v30, %v1235_v25 }
 0x2cd   : > { %v1238_v27 = vpop.f32.mrb[6].mxu1 }
 0x2ce   : > { %v3207_v28 = vpop.f32.mrb[7].mxu1  ;;  %v1265_v36 = vpack.c.bf16 %v1236_v32, %v1236_v32 }
 0x2d0   : > { %v1511_v38 = vsel %vm1509_vm3, %v1265_v36, 0 }
 0x338   : > { %v1249_v17 = vpop.permute.xlu1 %1248  ;;  %v1243_v18 = vpop.permute.xlu0 %1242 }
 0x339   : > { %v1252_v19 = vpack.c.bf16 %v1243_v18, %v1243_v18  ;;  %v1254_v22 = vpack.c.bf16 %v1249_v17, %v1249_v17 }
 0x33b   : > { %1320 = vrot.lane.b32.xlu0 %v1252_v19, %s4156_s11 }
 0x33c   : > { %v1246_v20 = vpop.permute.xlu0 %1245  ;;  %v1271_v21 = vpop.permute.xlu1 %1270 }
 0x33d   : > { %v1253_v23 = vpack.c.bf16 %v1246_v20, %v1246_v20  ;;  %v1277_v24 = vsel %vm1272_vm2, %v1271_v21, 0 }
 0x33e   : > { %3209 = vmatpush3.bf16.xpose.msra.mxu0 %v1277_v24 }
 0x33f   : > { %1418 = vrot.lane.b32.xlu0 %v1254_v22, %s4156_s11  ;;  %1369 = vrot.lane.b32.xlu1 %v1253_v23, %s4156_s11  ;;  %s5208_s11 = sld [smem:[#allocation46_spill]] }
 0x340   : > { %3220 = vmatprep.subr.bf16.mxu0 %v4151_v0 }
 0x345   : > { %3211 = vmatmul.mubr.msk.bf16.vlgmr.msra.gmra.mrb[0].mxu0 %vm1272_vm2, %v1251_v15 }
 0x346   : > { %3222 = vmatprep.mubr.msk.bf16.mxu0 %vm4152_vm0, %v4151_v0 }
 0x3ad   : > { %v1321_v29 = vpop.permute.xlu0 %1320 }
 0x3ae   : > { %v1326_v31 = vsel %vm1272_vm2, %v1321_v29, 0 }
 0x3af   : > { %3215 = vmatpush3.bf16.xpose.msra.mxu1 %v1326_v31 }
 0x3b0   : > { %3226 = vmatprep.subr.bf16.mxu1 %v4151_v0 }
 0x3b1   : > { %v1370_v33 = vpop.permute.xlu1 %1369  ;;  %v1419_v35 = vpop.permute.xlu0 %1418 }
 0x3b2   : > { %v1375_v34 = vsel %vm1272_vm2, %v1370_v33, 0  ;;  %v1424_v37 = vsel %vm1272_vm2, %v1419_v35, 0 }
 0x3b3   : > { %3221 = vmatpush3.bf16.xpose.msra.mxu0 %v1375_v34 }
 0x3b4   : > { %3232 = vmatprep.subr.bf16.mxu0 %v4151_v0 }
 0x3b6   : > { %3217 = vmatmul.mubr.msk.bf16.vlgmr.msra.gmra.mrb[8].mxu1 %vm1272_vm2, %v1252_v19 }
 0x3b7   : > { %3227 = vmatpush3.bf16.xpose.msra.mxu1 %v1424_v37  ;;  %3228 = vmatprep.mubr.msk.bf16.mxu1 %vm4152_vm0, %v4151_v0  ;;  %v3583_v37 = vld [vmem:[#allocation13] sm:$0xff]  }
 0x3b8   : > { %3238 = vmatprep.subr.bf16.mxu1 %v4151_v0 }
 0x3ba   : > { %3223 = vmatmul.mubr.msk.bf16.vlgmr.msra.gmra.mrb[4].mxu0 %vm1272_vm2, %v1253_v23 }
 0x3bb   : > { %3233 = vmatpush3.bf16.msra.mxu0 %v1511_v38  ;;  %3234 = vmatprep.mubr.msk.bf16.mxu0 %vm4152_vm0, %v4151_v0 }
 0x3bc   : > { %3244 = vmatprep.subr.bf16.mxu0 %v4151_v0 }
 0x3be   : > { %3229 = vmatmul.mubr.msk.bf16.vlgmr.msra.gmra.mrb[12].mxu1 %vm1272_vm2, %v1254_v22 }
 0x3bf   : > { %3240 = vmatprep.mubr.msk.bf16.mxu1 %vm4152_vm0, %v4151_v0 }
 0x418   : > { %v1313_v39 = vpop.f32.mrb[0].mxu0 }
 0x419   : > { %v3212_v40 = vpop.f32.mrb[1].mxu0  ;;  %v1466_v41 = vsel %vm1272_vm2, %v1313_v39, -inf }
 0x41a   : > { %1467 = vmax.xlane.f32.xlu1 %v1466_v41  ;;  %v1316_v42 = vpop.f32.mrb[2].mxu0 }
 0x41b   : > { %v3213_v43 = vpop.f32.mrb[3].mxu0 }
 0x42b   : > { %1259 = vrot.lane.b32.xlu1 %v1236_v32, %s4155_s7 }
 0x489   : > { %v1362_v44 = vpop.f32.mrb[8].mxu1 }
 0x48a   : > { %v3218_v45 = vpop.f32.mrb[9].mxu1  ;;  %v1469_v46 = vsel %vm1272_vm2, %v1362_v44, -inf }
 0x48b   : > { %1470 = vmax.xlane.f32.xlu0 %v1469_v46  ;;  %v1365_v47 = vpop.f32.mrb[10].mxu1 }
 0x48c   : > { %v3219_v48 = vpop.f32.mrb[11].mxu1 }
 0x48d   : > { %v1411_v49 = vpop.f32.mrb[4].mxu0 }
 0x48e   : > { %v3224_v50 = vpop.f32.mrb[5].mxu0  ;;  %v1472_v51 = vsel %vm1272_vm2, %v1411_v49, -inf }
 0x48f   : > { %v1414_v52 = vpop.f32.mrb[6].mxu0  ;;  %1473 = vmax.xlane.f32.xlu0 %v1472_v51 }
 0x490   : > { %v3225_v53 = vpop.f32.mrb[7].mxu0 }
 0x491   : > { %v1460_v54 = vpop.f32.mrb[12].mxu1 }
 0x492   : > { %v3230_v55 = vpop.f32.mrb[13].mxu1  ;;  %v1475_v56 = vsel %vm1272_vm2, %v1460_v54, -inf }
 0x493   : > { %1476 = vmax.xlane.f32.xlu1 %v1475_v56  ;;  %v1463_v57 = vpop.f32.mrb[14].mxu1 }
 0x494   : > { %v3231_v58 = vpop.f32.mrb[15].mxu1 }
 0x4a4   : > { %1262 = vrot.lane.b32.xlu1 %v1236_v32, %s4153_s21 }
 0x4a5   : > { %1256 = vrot.lane.b32.xlu0 %v1236_v32, %s4154_s25 }
 0x4a7   : > { %v1468_v59 = vpop.xlane.xlu1 %1467 }
 0x4a8   : > { %v1478_v60 = vsub.f32 %v1313_v39, %v1468_v59  ;;  %v3584_v39 = vld [vmem:[#allocation13 + $0x8] sm:$0xff]  }
 0x4aa   : > { %v1482_v61 = vmul.f32 1.442695, %v1478_v60 }
 0x4ab   : > { %v1260_v62 = vpop.permute.xlu1 %1259 }
 0x4ac   : > { %3599 = vpow2.f32 %v1482_v61  ;;  %v1267_v63 = vpack.c.bf16 %v1260_v62, %v1260_v62 }
 0x4ae   : > { %v1603_v5 = vsel %vm1509_vm3, %v1267_v63, 0 }
 0x4b6   : > { %v3600_v1 = vpop.eup %3599 }
 0x4b7   : > { %v1502_v2 = vpack.c.bf16 %v3600_v1, %v3600_v1  ;;  %v1490_v30 = vsel %vm1272_vm2, %v3600_v1, 0.0 }
 0x4b9   : > { %3235 = vmatmul.mubr.msk.bf16.vlgmr.msra.gmra.mrb[8].mxu0 %vm1272_vm2, %v1502_v2 }
 0x4ba   : > { %3245 = vmatpush3.bf16.msra.mxu0 %v1603_v5  ;;  %3246 = vmatprep.mubr.msk.bf16.mxu0 %vm4152_vm0, %v4151_v0 }
 0x4bb   : > { %3256 = vmatprep.subr.bf16.mxu0 %v4151_v0 }
 0x518   : > { %v1471_v6 = vpop.xlane.xlu0 %1470 }
 0x519   : > { %v1479_v7 = vsub.f32 %v1362_v44, %v1471_v6 }
 0x51b   : > { %v1484_v8 = vmul.f32 1.442695, %v1479_v7  ;;  %v3081_v7 = vld [vmem:[#allocation14] ss:$0 sm:$0xff] }
 0x51c   : > { %v1474_v9 = vpop.xlane.xlu0 %1473 }
 0x51d   : > { %3601 = vpow2.f32 %v1484_v8  ;;  %v1480_v10 = vsub.f32 %v1411_v49, %v1474_v9 }
 0x51f   : > { %v1486_v11 = vmul.f32 1.442695, %v1480_v10 }
 0x520   : > { %v1257_v12 = vpop.permute.xlu0 %1256  ;;  %v1477_v13 = vpop.xlane.xlu1 %1476 }
 0x521   : > { %3603 = vpow2.f32 %v1486_v11  ;;  %v1266_v14 = vpack.c.bf16 %v1257_v12, %v1257_v12  ;;  %v1481_v15 = vsub.f32 %v1460_v54, %v1477_v13 }
 0x523   : > { %v1557_v16 = vsel %vm1509_vm3, %v1266_v14, 0  ;;  %v1488_v17 = vmul.f32 1.442695, %v1481_v15  ;;  %v3585_v15 = vld [vmem:[#allocation17] sm:$0xff]  }
 0x524   : > { %3239 = vmatpush3.bf16.msra.mxu1 %v1557_v16  ;;  %v1263_v18 = vpop.permute.xlu1 %1262 }
 0x525   : > { %3605 = vpow2.f32 %v1488_v17  ;;  %3250 = vmatprep.subr.bf16.mxu1 %v4151_v0  ;;  %v1268_v19 = vpack.c.bf16 %v1263_v18, %v1263_v18 }
 0x527   : > { %v3602_v20 = vpop.eup %3601  ;;  %v1649_v23 = vsel %vm1509_vm3, %v1268_v19, 0 }
 0x528   : > { %v1493_v21 = vsel %vm1272_vm2, %v3602_v20, 0.0  ;;  %v1503_v22 = vpack.c.bf16 %v3602_v20, %v3602_v20 }
 0x529   : > { %1494 = vadd.xlane.f32.xlu0 %v1493_v21  ;;  %v1101_v21 = vld [vmem:[%s1097_s27] sm:$0xff] }
 0x52a   : > { %3241 = vmatmul.mubr.msk.bf16.vlgmr.msra.gmra.mrb[16].mxu1 %vm1272_vm2, %v1503_v22  ;;  %v1102_v22 = vld [vmem:[%s1097_s27 + $0x8] sm:$0xff]  ;;  %s1088_s27 = scalar_lea.vmem [#allocation25], %s3047_s24  ;;  %s4037_s24 = sshll.u32 %s4160_s10, 4  ;;  %s4038_s24 = int_to_ptr.vmem [resolvable:$false] %s4037_s24 }
 0x52b   : > { %v3604_v24 = vpop.eup %3603  ;;  %3251 = vmatpush3.bf16.msra.mxu1 %v1649_v23  ;;  %3252 = vmatprep.mubr.msk.bf16.mxu1 %vm4152_vm0, %v4151_v0  ;;  %v1103_v23 = vld [vmem:[%s4741_s28] sm:$0xff] }
 0x52c   : > { %v1496_v25 = vsel %vm1272_vm2, %v3604_v24, 0.0  ;;  %v1504_v26 = vpack.c.bf16 %v3604_v24, %v3604_v24  ;;  %3264 = vmatprep.subr.bf16.mxu1 %v4151_v0  ;;  %v1104_v24 = vld [vmem:[%s4741_s28 + $0x8] sm:$0xff]  ;;  %s5216_s28 = sld [smem:[#allocation60_spill]] }
 0x52d   : > { %1497 = vadd.xlane.f32.xlu1 %v1496_v25  ;;  %v1882_v25 = vadd.f32 %v1103_v23, %v1101_v21 }
 0x52e   : > { %3247 = vmatmul.mubr.msk.bf16.vlgmr.msra.gmra.mrb[12].mxu0 %vm1272_vm2, %v1504_v26  ;;  %v1883_v26 = vadd.f32 %v1104_v24, %v1102_v22 }
 0x52f   : > { %v3606_v27 = vpop.eup %3605  ;;  %3260 = vmatprep.mubr.msk.bf16.mxu0 %vm4152_vm0, %v4151_v0  ;;  %3257 = vmatpush3.bf16.msra.mxu0 %v3583_v37 }
 0x530   : > { %v1499_v28 = vsel %vm1272_vm2, %v3606_v27, 0.0  ;;  %v1505_v29 = vpack.c.bf16 %v3606_v27, %v3606_v27  ;;  %3258 = vmatprep.subr.bf16.mxu0 %v4151_v0  ;;  %v1884_v27 = vpack.c.bf16 %v1883_v26, %v1882_v25 }
 0x531   : > { %1500 = vadd.xlane.f32.xlu0 %v1499_v28  ;;  %v3587_v28 = vld [vmem:[%s5208_s11] sm:$0xff]  }
 0x532   : > { %3253 = vmatmul.mubr.msk.bf16.vlgmr.msra.gmra.mrb[20].mxu1 %vm1272_vm2, %v1505_v29  ;;  %v3588_v29 = vld [vmem:[%s5208_s11 + $0x8] sm:$0xff]  }
 0x533   : > { %3268 = vmatprep.mubr.msk.bf16.mxu1 %vm4152_vm0, %v4151_v0  ;;  %3259 = vmatpush3.bf16.msra.mxu0 %v3584_v39 }
 0x534   : > { %3272 = vmatprep.subr.bf16.mxu0 %v4151_v0  ;;  %3265 = vmatpush3.bf16.msra.mxu1 %v3587_v28 }
 0x535   : > { %1491 = vadd.xlane.f32.xlu0 %v1490_v30  ;;  %3266 = vmatprep.subr.bf16.mxu1 %v4151_v0 }
 0x538   : > { %3267 = vmatpush3.bf16.msra.mxu1 %v3588_v29 }
 0x539   : > { %3280 = vmatprep.subr.bf16.mxu1 %v4151_v0 }
 0x58c   : > { %v1547_v31 = vpop.f32.mrb[8].mxu0 }
 0x58d   : > { %v3236_v32 = vpop.f32.mrb[9].mxu0 }
 0x58e   : > { %v1550_v33 = vpop.f32.mrb[10].mxu0 }
 0x58f   : > { %v3237_v34 = vpop.f32.mrb[11].mxu0 }
 0x590   : > { %v3085_v34 = vld [vmem:[%s5098_s18] ss:$0 sm:$0xff] }
 0x5b6   : > { %v1495_v35 = vpop.xlane.xlu0 %1494 }
 0x5b7   : > { %3607 = vrcp.f32 %v1495_v35 }
 0x5ba   : > { %v1498_v36 = vpop.xlane.xlu1 %1497 }
 0x5bb   : > { %3609 = vrcp.f32 %v1498_v36  ;;  %v3086_v36 = vld [vmem:[%s5099_s19] ss:$0 sm:$0xff] }
 0x5be   : > { %v1501_v38 = vpop.xlane.xlu0 %1500 }
 0x5bf   : > { %3611 = vrcp.f32 %v1501_v38 }
 0x5c1   : > { %v3608_v40 = vpop.eup %3607 }
 0x5c2   : > { %v1492_v58 = vpop.xlane.xlu0 %1491 }
 0x5c3   : > { %3613 = vrcp.f32 %v1492_v58 }
 0x5c5   : > { %v3610_v46 = vpop.eup %3609 }
 0x5c9   : > { %v3612_v52 = vpop.eup %3611 }
 0x5cd   : > { %v3614_v59 = vpop.eup %3613 }
 0x5ce   : > { %v1695_v61 = vmul.f32 %v3614_v59, %v1547_v31 }
 0x5fd   : > { %v1593_v41 = vpop.f32.mrb[16].mxu1 }
 0x5fe   : > { %v1696_v42 = vmul.f32 %v3608_v40, %v1593_v41  ;;  %v3242_v43 = vpop.f32.mrb[17].mxu1  ;;  %v3091_v41 = vld [vmem:[#allocation19] ss:$0 sm:$0xff] }
 0x5ff   : > { %v1596_v44 = vpop.f32.mrb[18].mxu1 }
 0x600   : > { %1700 = vrot.lane.b32.xlu1 %v1696_v42, %s4157_s6  ;;  %v3243_v45 = vpop.f32.mrb[19].mxu1 }
 0x601   : > { %v1639_v47 = vpop.f32.mrb[12].mxu0 }
 0x602   : > { %v1697_v48 = vmul.f32 %v3610_v46, %v1639_v47  ;;  %v3248_v49 = vpop.f32.mrb[13].mxu0 }
 0x603   : > { %v1642_v50 = vpop.f32.mrb[14].mxu0 }
 0x604   : > { %v3249_v51 = vpop.f32.mrb[15].mxu0  ;;  %1704 = vrot.lane.b32.xlu0 %v1697_v48, %s4158_s17  ;;  %v3589_v50 = vld [vmem:[%s5094_s14] sm:$0xff]  }
 0x605   : > { %v1685_v53 = vpop.f32.mrb[20].mxu1  ;;  %v3590_v51 = vld [vmem:[%s5094_s14 + $0x8] sm:$0xff]  }
 0x606   : > { %v1698_v54 = vmul.f32 %v3612_v52, %v1685_v53  ;;  %v3254_v55 = vpop.f32.mrb[21].mxu1  ;;  %v1952_v52 = vpack.c.bf16 %v1102_v22, %v1101_v21 }
 0x607   : > { %v1688_v56 = vpop.f32.mrb[22].mxu1 }
 0x608   : > { %1708 = vrot.lane.b32.xlu1 %v1698_v54, %s4159_s0  ;;  %v3255_v57 = vpop.f32.mrb[23].mxu1 }
 0x672   : > { %v1701_v60 = vpop.permute.xlu1 %1700 }
 0x673   : > { %v1711_v63 = vsel %vm1272_vm2, %v1695_v61, %v1701_v60  ;;  %v3087_v61 = vld [vmem:[#allocation16] ss:$0 sm:$0xff] }
 0x676   : > { %v1705_v62 = vpop.permute.xlu0 %1704 }
 0x677   : > { %v1713_v1 = vsel %vm1712_vm4, %v1711_v63, %v1705_v62 }
 0x67a   : > { %v1709_v2 = vpop.permute.xlu1 %1708 }
 0x67b   : > { %v1715_v5 = vsel %vm1714_vm5, %v1713_v1, %v1709_v2 }
 0x67c   : > { %v1716_v6 = vpack.c.bf16 %v1715_v5, %v1715_v5 }
 0x67e   : > { %3261 = vmatmul.mubr.msk.bf16.vlgmr.msra.gmra.mrb[16].mxu0 %vm1130_vm1, %v1716_v6 }
 0x67f   : > { %3276 = vmatprep.mubr.msk.bf16.mxu0 %vm4152_vm0, %v4151_v0  ;;  %3273 = vmatpush3.bf16.msra.mxu0 %v3585_v15 }
 0x680   : > { %3274 = vmatprep.subr.bf16.mxu0 %v4151_v0 }
 0x751   : > { %v1777_v8 = vpop.f32.mrb[16].mxu0 }
 0x752   : > { %v1778_v9 = vadd.f32 %v3081_v7, %v1777_v8  ;;  %v3262_v10 = vpop.f32.mrb[17].mxu0 }
 0x753   : > { %v1780_v11 = vpop.f32.mrb[18].mxu0 }
 0x754   : > { %v3263_v12 = vpop.f32.mrb[19].mxu0  ;;  %v1783_v13 = vadd.f32 %v1778_v9, %v4789_v3  ;;  %v3586_v3 = vld [vmem:[#allocation17 + $0x8] sm:$0xff]  }
 0x755   : > { %3275 = vmatpush3.bf16.msra.mxu0 %v3586_v3 }
 0x756   : > { %v1784_v14 = vsel %vm1130_vm1, %v1783_v13, 0.0  ;;  %3288 = vmatprep.subr.bf16.mxu0 %v4151_v0 }
 0x757   : > { %1785 = vadd.xlane.f32.xlu1 %v1784_v14 }
 0x758   : > { %3277 = vmatmul.mubr.msk.bf16.vlgmr.msra.gmra.mrb[20].mxu0 %vm1130_vm1, %v1884_v27 }
 0x759   : > { %3290 = vmatprep.mubr.msk.bf16.mxu0 %vm4152_vm0, %v4151_v0 }
 0x7e4   : > { %v1786_v16 = vpop.xlane.xlu1 %1785 }
 0x7e5   : > { %v1788_v17 = vmul.f32 0.03125, %v1786_v16  ;;  %v3095_v16 = vld [vmem:[#allocation20] ss:$0 sm:$0xff] }
 0x7e7   : > { %v1789_v18 = vsub.f32 %v1783_v13, %v1788_v17 }
 0x7e9   : > { %v1790_v19 = vmul.f32 %v1789_v18, %v1789_v18 }
 0x7eb   : > { %v1791_v20 = vsel %vm1130_vm1, %v1790_v19, 0.0 }
 0x7ec   : > { %1792 = vadd.xlane.f32.xlu0 %v1791_v20 }
 0x82b   : > { %v1945_v42 = vpop.f32.mrb[20].mxu0 }
 0x82c   : > { %v1946_v43 = vadd.f32 %v3091_v41, %v1945_v42  ;;  %v3278_v44 = vpop.f32.mrb[21].mxu0 }
 0x82d   : > { %v1948_v45 = vpop.f32.mrb[22].mxu0 }
 0x82e   : > { %v1949_v46 = vadd.f32 %v3091_v41, %v1948_v45  ;;  %v3279_v47 = vpop.f32.mrb[23].mxu0 }
 0x830   : > { %v3549_v48 = vpack.i.bf16 %v1949_v46, %v1946_v43  ;;  %v2054_v49 = vpack.c.bf16 %v1949_v46, %v1946_v43 }
 0x832   : > { %3550 = vrot.lane.b32.xlu0 %v3549_v48, %s4154_s25  ;;  %3555 = vrot.lane.b32.xlu1 %v3549_v48, %s4155_s7 }
 0x836   : > { %3560 = vrot.lane.b32.xlu0 %v3549_v48, %s4153_s21 }
 0x879   : > { %v1793_v30 = vpop.xlane.xlu0 %1792 }
 0x87a   : > { %v1794_v31 = vmul.f32 0.03125, %v1793_v30 }
 0x87c   : > { %v1795_v32 = vadd.f32 1e-05, %v1794_v31 }
 0x87e   : > { %3615 = vrsqrt.f32 %v1795_v32 }
 0x888   : > { %v3616_v33 = vpop.eup %3615 }
 0x889   : > { %v1797_v35 = vmul.f32 %v3616_v33, %v1789_v18 }
 0x88b   : > { %v1805_v37 = vmul.f32 %v3085_v34, %v1797_v35 }
 0x88d   : > { %v4901_v38 = vadd.f32 %v3086_v36, %v1805_v37 }
 0x88f   : > { %v1814_v39 = vadd.f32 %v4901_v38, %v4792_v4  ;;  %v2086_v4 = vsel %vm1272_vm2, %v2054_v49, 0 }
 0x890   : > { %3289 = vmatpush3.bf16.xpose.msra.mxu0 %v2086_v4 }
 0x891   : > { %v1815_v40 = vpack.c.bf16 %v1814_v39, %v1814_v39  ;;  %3300 = vmatprep.subr.bf16.mxu0 %v4151_v0 }
 0x893   : > { %3269 = vmatmul.mubr.msk.bf16.vlgmr.msra.gmra.mrb[24].mxu1 %vm1130_vm1, %v1815_v40 }
 0x894   : > { %3284 = vmatprep.mubr.msk.bf16.mxu1 %vm4152_vm0, %v4151_v0  ;;  %3281 = vmatpush3.bf16.msra.mxu1 %v3589_v50 }
 0x895   : > { %3282 = vmatprep.subr.bf16.mxu1 %v4151_v0 }
 0x898   : > { %3283 = vmatpush3.bf16.msra.mxu1 %v3590_v51 }
 0x899   : > { %3294 = vmatprep.subr.bf16.mxu1 %v4151_v0 }
 0x89b   : > { %3285 = vmatmul.mubr.msk.bf16.vlgmr.msra.gmra.mrb[28].mxu1 %vm1130_vm1, %v1952_v52 }
 0x89c   : > { %3296 = vmatprep.mubr.msk.bf16.mxu1 %vm4152_vm0, %v4151_v0 }
 0x8a4   : > { %v3551_v53 = vpop.permute.xlu0 %3550  ;;  %v3556_v58 = vpop.permute.xlu1 %3555 }
 0x8a5   : > { %v3553_v54 = vunpack.i.h.bf16 %v3551_v53  ;;  %v3552_v55 = vunpack.i.l.bf16 %v3551_v53  ;;  %v3558_v59 = vunpack.i.h.bf16 %v3556_v58  ;;  %v3557_v60 = vunpack.i.l.bf16 %v3556_v58 }
 0x8a7   : > { %v2055_v56 = vpack.c.bf16 %v3553_v54, %v3552_v55  ;;  %v2056_v62 = vpack.c.bf16 %v3558_v59, %v3557_v60 }
 0x8a8   : > { %v3561_v13 = vpop.permute.xlu0 %3560 }
 0x8a9   : > { %v2132_v57 = vsel %vm1272_vm2, %v2055_v56, 0  ;;  %v2178_v8 = vsel %vm1272_vm2, %v2056_v62, 0  ;;  %v3563_v14 = vunpack.i.h.bf16 %v3561_v13  ;;  %v3562_v15 = vunpack.i.l.bf16 %v3561_v13 }
 0x8aa   : > { %3295 = vmatpush3.bf16.xpose.msra.mxu1 %v2132_v57 }
 0x8ab   : > { %3306 = vmatprep.subr.bf16.mxu1 %v4151_v0  ;;  %v2057_v17 = vpack.c.bf16 %v3563_v14, %v3562_v15 }
 0x8ad   : > { %v2224_v21 = vsel %vm1272_vm2, %v2057_v17, 0 }
 0x966   : > { %v1876_v63 = vpop.f32.mrb[24].mxu1 }
 0x967   : > { %v1877_v1 = vadd.f32 %v3087_v61, %v1876_v63  ;;  %v3270_v2 = vpop.f32.mrb[25].mxu1 }
 0x968   : > { %v1879_v5 = vpop.f32.mrb[26].mxu1 }
 0x969   : > { %v2030_v6 = vpack.c.bf16 %v1877_v1, %v1877_v1  ;;  %2027 = vrot.lane.b32.xlu0 %v1877_v1, %s4153_s21  ;;  %2021 = vrot.lane.b32.xlu1 %v1877_v1, %s4154_s25  ;;  %v3271_v7 = vpop.f32.mrb[27].mxu1 }
 0x96b   : > { %3291 = vmatmul.mubr.msk.bf16.vlgmr.msra.gmra.mrb[24].mxu0 %vm1272_vm2, %v2030_v6 }
 0x96c   : > { %3301 = vmatpush3.bf16.xpose.msra.mxu0 %v2178_v8  ;;  %3302 = vmatprep.mubr.msk.bf16.mxu0 %vm4152_vm0, %v4151_v0 }
 0x96d   : > { %2024 = vrot.lane.b32.xlu1 %v1877_v1, %s4155_s7  ;;  %3312 = vmatprep.subr.bf16.mxu0 %v4151_v0 }
 0x96e   : > { %v2013_v9 = vpop.f32.mrb[28].mxu1 }
 0x96f   : > { %v3286_v10 = vpop.f32.mrb[29].mxu1  ;;  %v2014_v19 = vadd.f32 %v3095_v16, %v2013_v9 }
 0x970   : > { %v2016_v11 = vpop.f32.mrb[30].mxu1 }
 0x971   : > { %v3287_v12 = vpop.f32.mrb[31].mxu1  ;;  %v2017_v20 = vadd.f32 %v3095_v16, %v2016_v11 }
 0x973   : > { %v2078_v23 = vpack.c.bf16 %v2017_v20, %v2014_v19  ;;  %v3569_v32 = vpack.i.bf16 %v2017_v20, %v2014_v19 }
 0x9db   : > { %v2022_v18 = vpop.permute.xlu1 %2021  ;;  %v2028_v25 = vpop.permute.xlu0 %2027 }
 0x9dc   : > { %v2031_v3 = vpack.c.bf16 %v2022_v18, %v2022_v18  ;;  %v2033_v26 = vpack.c.bf16 %v2028_v25, %v2028_v25 }
 0x9de   : > { %3297 = vmatmul.mubr.msk.bf16.vlgmr.msra.gmra.mrb[32].mxu1 %vm1272_vm2, %v2031_v3 }
 0x9df   : > { %3307 = vmatpush3.bf16.xpose.msra.mxu1 %v2224_v21  ;;  %v2025_v22 = vpop.permute.xlu1 %2024  ;;  %3308 = vmatprep.mubr.msk.bf16.mxu1 %vm4152_vm0, %v4151_v0 }
 0x9e0   : > { %v2032_v24 = vpack.c.bf16 %v2025_v22, %v2025_v22  ;;  %3318 = vmatprep.subr.bf16.mxu1 %v4151_v0 }
 0x9e2   : > { %3303 = vmatmul.mubr.msk.bf16.vlgmr.msra.gmra.mrb[28].mxu0 %vm1272_vm2, %v2032_v24 }
 0x9e3   : > { %3313 = vmatpush3.bf16.msra.mxu0 %v2078_v23  ;;  %3314 = vmatprep.mubr.msk.bf16.mxu0 %vm4152_vm0, %v4151_v0 }
 0x9e4   : > { %3324 = vmatprep.subr.bf16.mxu0 %v4151_v0 }
 0x9e6   : > { %3309 = vmatmul.mubr.msk.bf16.vlgmr.msra.gmra.mrb[36].mxu1 %vm1272_vm2, %v2033_v26 }
 0x9e7   : > { %3320 = vmatprep.mubr.msk.bf16.mxu1 %vm4152_vm0, %v4151_v0 }
 0xa3e   : > { %v2122_v27 = vpop.f32.mrb[24].mxu0 }
 0xa3f   : > { %v3292_v28 = vpop.f32.mrb[25].mxu0  ;;  %v2266_v29 = vsel %vm1712_vm4, %v2122_v27, -inf }
 0xa40   : > { %2267 = vmax.xlane.f32.xlu1 %v2266_v29  ;;  %v2125_v30 = vpop.f32.mrb[26].mxu0  ;;  %v3591_v28 = vld [vmem:[#allocation22] sm:$0xff]  }
 0xa41   : > { %v3293_v31 = vpop.f32.mrb[27].mxu0  ;;  %v3592_v30 = vld [vmem:[#allocation22 + $0x8] sm:$0xff]  }
 0xa51   : > { %3570 = vrot.lane.b32.xlu1 %v3569_v32, %s4155_s7  ;;  %s5209_s7 = sld [smem:[#allocation55_spill]] }
 0xab1   : > { %v2168_v33 = vpop.f32.mrb[32].mxu1 }
 0xab2   : > { %v3298_v34 = vpop.f32.mrb[33].mxu1  ;;  %v2269_v35 = vsel %vm1712_vm4, %v2168_v33, -inf }
 0xab3   : > { %2270 = vmax.xlane.f32.xlu0 %v2269_v35  ;;  %v2171_v36 = vpop.f32.mrb[34].mxu1 }
 0xab4   : > { %v3299_v37 = vpop.f32.mrb[35].mxu1 }
 0xab5   : > { %v2214_v39 = vpop.f32.mrb[28].mxu0 }
 0xab6   : > { %v3304_v40 = vpop.f32.mrb[29].mxu0  ;;  %v2272_v41 = vsel %vm1712_vm4, %v2214_v39, -inf }
 0xab7   : > { %v2217_v42 = vpop.f32.mrb[30].mxu0  ;;  %2273 = vmax.xlane.f32.xlu0 %v2272_v41 }
 0xab8   : > { %v3305_v43 = vpop.f32.mrb[31].mxu0 }
 0xab9   : > { %v2260_v44 = vpop.f32.mrb[36].mxu1 }
 0xaba   : > { %v3310_v45 = vpop.f32.mrb[37].mxu1  ;;  %v2275_v46 = vsel %vm1712_vm4, %v2260_v44, -inf }
 0xabb   : > { %2276 = vmax.xlane.f32.xlu1 %v2275_v46  ;;  %v2263_v47 = vpop.f32.mrb[38].mxu1 }
 0xabc   : > { %v3311_v48 = vpop.f32.mrb[39].mxu1 }
 0xacc   : > { %3575 = vrot.lane.b32.xlu1 %v3569_v32, %s4153_s21  ;;  %s2782_s21 = scalar_lea.sflag [#allocation4], %s4727_s26 }
 0xacd   : > { %v2268_v49 = vpop.xlane.xlu1 %2267  ;;  %3565 = vrot.lane.b32.xlu0 %v3569_v32, %s4154_s25  ;;  %s5212_s25 = sld [smem:[#allocation54_spill]] }
 0xace   : > { %v2278_v4 = vsub.f32 %v2122_v27, %v2268_v49 }
 0xad0   : > { %v2282_v50 = vmul.f32 1.442695, %v2278_v4 }
 0xad1   : > { %v3571_v51 = vpop.permute.xlu1 %3570 }
 0xad2   : > { %3617 = vpow2.f32 %v2282_v50  ;;  %v3573_v52 = vunpack.i.h.bf16 %v3571_v51  ;;  %v3572_v53 = vunpack.i.l.bf16 %v3571_v51 }
 0xad4   : > { %v2080_v55 = vpack.c.bf16 %v3573_v52, %v3572_v53 }
 0xadc   : > { %v3618_v54 = vpop.eup %3617 }
 0xadd   : > { %v2302_v56 = vpack.c.bf16 %v3618_v54, %v3618_v54  ;;  %v2290_v21 = vsel %vm1712_vm4, %v3618_v54, 0.0 }
 0xadf   : > { %3315 = vmatmul.mubr.msk.bf16.vlgmr.msra.gmra.mrb[32].mxu0 %vm1712_vm4, %v2302_v56 }
 0xae0   : > { %3325 = vmatpush3.bf16.msra.mxu0 %v2080_v55  ;;  %3326 = vmatprep.mubr.msk.bf16.mxu0 %vm4152_vm0, %v4151_v0 }
 0xae1   : > { %3336 = vmatprep.subr.bf16.mxu0 %v4151_v0 }
 0xb40   : > { %v2271_v57 = vpop.xlane.xlu0 %2270 }
 0xb41   : > { %v2279_v58 = vsub.f32 %v2168_v33, %v2271_v57 }
 0xb43   : > { %v2284_v59 = vmul.f32 1.442695, %v2279_v58 }
 0xb44   : > { %v2274_v60 = vpop.xlane.xlu0 %2273 }
 0xb45   : > { %3619 = vpow2.f32 %v2284_v59  ;;  %v2280_v61 = vsub.f32 %v2214_v39, %v2274_v60  ;;  %v3107_v59 = vld [vmem:[#allocation23] ss:$0 sm:$0xff] }
 0xb47   : > { %v2286_v62 = vmul.f32 1.442695, %v2280_v61 }
 0xb48   : > { %v3566_v63 = vpop.permute.xlu0 %3565  ;;  %v2277_v1 = vpop.xlane.xlu1 %2276 }
 0xb49   : > { %3621 = vpow2.f32 %v2286_v62  ;;  %v3568_v2 = vunpack.i.h.bf16 %v3566_v63  ;;  %v3567_v5 = vunpack.i.l.bf16 %v3566_v63  ;;  %v2281_v6 = vsub.f32 %v2260_v44, %v2277_v1 }
 0xb4b   : > { %v2079_v7 = vpack.c.bf16 %v3568_v2, %v3567_v5  ;;  %v2288_v8 = vmul.f32 1.442695, %v2281_v6 }
 0xb4c   : > { %v3576_v9 = vpop.permute.xlu1 %3575 }
 0xb4d   : > { %3623 = vpow2.f32 %v2288_v8  ;;  %v3578_v10 = vunpack.i.h.bf16 %v3576_v9  ;;  %v3577_v11 = vunpack.i.l.bf16 %v3576_v9  ;;  %3319 = vmatpush3.bf16.msra.mxu1 %v2079_v7 }
 0xb4e   : > { %3330 = vmatprep.subr.bf16.mxu1 %v4151_v0 }
 0xb4f   : > { %v3620_v12 = vpop.eup %3619  ;;  %v2081_v13 = vpack.c.bf16 %v3578_v10, %v3577_v11  ;;  %v3593_v11 = vld [vmem:[%s5209_s7] sm:$0xff]  }
 0xb50   : > { %v2293_v14 = vsel %vm1712_vm4, %v3620_v12, 0.0  ;;  %v2303_v15 = vpack.c.bf16 %v3620_v12, %v3620_v12  ;;  %v3594_v12 = vld [vmem:[%s5209_s7 + $0x8] sm:$0xff]  }
 0xb51   : > { %2294 = vadd.xlane.f32.xlu0 %v2293_v14 }
 0xb52   : > { %3321 = vmatmul.mubr.msk.bf16.vlgmr.msra.gmra.mrb[40].mxu1 %vm1712_vm4, %v2303_v15 }
 0xb53   : > { %v3622_v16 = vpop.eup %3621  ;;  %3331 = vmatpush3.bf16.msra.mxu1 %v2081_v13  ;;  %3332 = vmatprep.mubr.msk.bf16.mxu1 %vm4152_vm0, %v4151_v0  ;;  %v3596_v13 = vld [vmem:[%s5210_s15 + $0x8] sm:$0xff]  }
 0xb54   : > { %v2296_v17 = vsel %vm1712_vm4, %v3622_v16, 0.0  ;;  %v2304_v18 = vpack.c.bf16 %v3622_v16, %v3622_v16  ;;  %3344 = vmatprep.subr.bf16.mxu1 %v4151_v0 }
 0xb55   : > { %2297 = vadd.xlane.f32.xlu1 %v2296_v17 }
 0xb56   : > { %3327 = vmatmul.mubr.msk.bf16.vlgmr.msra.gmra.mrb[36].mxu0 %vm1712_vm4, %v2304_v18  ;;  %v3111_v18 = vld [vmem:[%s5211_s1] ss:$0 sm:$0xff] }
 0xb57   : > { %v3624_v19 = vpop.eup %3623  ;;  %3340 = vmatprep.mubr.msk.bf16.mxu0 %vm4152_vm0, %v4151_v0  ;;  %3337 = vmatpush3.bf16.msra.mxu0 %v3591_v28 }
 0xb58   : > { %v2299_v20 = vsel %vm1712_vm4, %v3624_v19, 0.0  ;;  %v2305_v3 = vpack.c.bf16 %v3624_v19, %v3624_v19  ;;  %3338 = vmatprep.subr.bf16.mxu0 %v4151_v0 }
 0xb59   : > { %2300 = vadd.xlane.f32.xlu0 %v2299_v20  ;;  %v3112_v20 = vld [vmem:[%s5212_s25] ss:$0 sm:$0xff] }
 0xb5a   : > { %3333 = vmatmul.mubr.msk.bf16.vlgmr.msra.gmra.mrb[44].mxu1 %vm1712_vm4, %v2305_v3 }
 0xb5b   : > { %3348 = vmatprep.mubr.msk.bf16.mxu1 %vm4152_vm0, %v4151_v0  ;;  %3339 = vmatpush3.bf16.msra.mxu0 %v3592_v30 }
 0xb5c   : > { %3352 = vmatprep.subr.bf16.mxu0 %v4151_v0  ;;  %3345 = vmatpush3.bf16.msra.mxu1 %v3593_v11 }
 0xb5d   : > { %2291 = vadd.xlane.f32.xlu0 %v2290_v21  ;;  %3346 = vmatprep.subr.bf16.mxu1 %v4151_v0 }
 0xb60   : > { %3347 = vmatpush3.bf16.msra.mxu1 %v3594_v12 }
 0xbb2   : > { %v2343_v22 = vpop.f32.mrb[32].mxu0 }
 0xbb3   : > { %v3316_v23 = vpop.f32.mrb[33].mxu0 }
 0xbb4   : > { %v2346_v24 = vpop.f32.mrb[34].mxu0  ;;  %v3597_v23 = vld [vmem:[%s5210_s15 + $0x10] sm:$0xff]  }
 0xbb5   : > { %v3317_v25 = vpop.f32.mrb[35].mxu0  ;;  %v3598_v24 = vld [vmem:[%s5210_s15 + $0x18] sm:$0xff]  }
 0xbb6   : > { %v3113_v25 = vld [vmem:[%s5213_s12] ss:$0 sm:$0xff]  ;;  %s2795_s12 = sshll.u32 %s1088_s27, 4  ;;  %s5037_s12 = int_to_ptr.vmem [resolvable:$true] %s2795_s12 }
 0xbb7   : > { %s4033_s25 = scalar_lea.vmem %s5037_s12, 128  ;;  %p4040_p3 = scmp.lt.s32.totalorder %s5037_s12, %s4038_s24 }
 0xbb8   : > { %p4034_p0 = scmp.ne.s32.totalorder %s5037_s12, %s4033_s25 }
 0xbba   : > { %p4035_p13 = pnand %p4034_p0, %p5218_p12 }
 0xbbc   : > { %p4036_p1 = pneg %p4035_p13 }
 0xbde   : > { %v2295_v26 = vpop.xlane.xlu0 %2294 }
 0xbdf   : > { %3625 = vrcp.f32 %v2295_v26 }
 0xbe2   : > { %v2298_v27 = vpop.xlane.xlu1 %2297 }
 0xbe3   : > { %3627 = vrcp.f32 %v2298_v27 }
 0xbe6   : > { %v2301_v29 = vpop.xlane.xlu0 %2300 }
 0xbe7   : > { %3629 = vrcp.f32 %v2301_v29 }
 0xbe9   : > { %v3626_v31 = vpop.eup %3625 }
 0xbea   : > { %v2292_v4 = vpop.xlane.xlu0 %2291 }
 0xbeb   : > { %3631 = vrcp.f32 %v2292_v4 }
 0xbed   : > { %v3628_v37 = vpop.eup %3627 }
 0xbf1   : > { %v3630_v44 = vpop.eup %3629 }
 0xbf5   : > { %v3632_v50 = vpop.eup %3631 }
 0xbf6   : > { %v2482_v52 = vmul.f32 %v3632_v50, %v2343_v22 }
 0xc25   : > { %v2386_v32 = vpop.f32.mrb[40].mxu1 }
 0xc26   : > { %v2483_v33 = vmul.f32 %v3626_v31, %v2386_v32  ;;  %v3322_v34 = vpop.f32.mrb[41].mxu1 }
 0xc27   : > { %v2389_v35 = vpop.f32.mrb[42].mxu1 }
 0xc28   : > { %2487 = vrot.lane.b32.xlu1 %v2483_v33, %s4157_s6  ;;  %v3323_v36 = vpop.f32.mrb[43].mxu1  ;;  %s5215_s6 = sld [smem:[#allocation59_spill]] }
 0xc29   : > { %v2429_v39 = vpop.f32.mrb[36].mxu0 }
 0xc2a   : > { %v2484_v40 = vmul.f32 %v3628_v37, %v2429_v39  ;;  %v3328_v41 = vpop.f32.mrb[37].mxu0 }
 0xc2b   : > { %v2432_v42 = vpop.f32.mrb[38].mxu0 }
 0xc2c   : > { %v3329_v43 = vpop.f32.mrb[39].mxu0  ;;  %2491 = vrot.lane.b32.xlu0 %v2484_v40, %s4158_s17 }
 0xc2d   : > { %v2472_v45 = vpop.f32.mrb[44].mxu1 }
 0xc2e   : > { %v2485_v46 = vmul.f32 %v3630_v44, %v2472_v45  ;;  %v3334_v47 = vpop.f32.mrb[45].mxu1  ;;  %v3123_v4 = vld [vmem:[%s5215_s6] ss:$0 sm:$0xff]  ;;  %s4039_s6 = scalar_lea.vmem %s4038_s24, 256 }
 0xc2f   : > { %v2475_v48 = vpop.f32.mrb[46].mxu1  ;;  %p4041_p6 = scmp.lt.s32.totalorder %s4039_s6, %s4033_s25 }
 0xc30   : > { %2495 = vrot.lane.b32.xlu1 %v2485_v46, %s4159_s0  ;;  %v3335_v49 = vpop.f32.mrb[47].mxu1 }
 0xc31   : > { %p4042_p2 = por %p4041_p6, %p4040_p3 }
 0xc33   : > { %p4043_p4 = pnand %p4042_p2, %p4036_p1 }
 0xc9a   : > { %v2488_v51 = vpop.permute.xlu1 %2487 }
 0xc9b   : > { %v2498_v54 = vsel %vm1272_vm2, %v2482_v52, %v2488_v51  ;;  %v3124_v51 = vld [vmem:[%s5216_s28] ss:$0 sm:$0xff] }
 0xc9e   : > { %v2492_v53 = vpop.permute.xlu0 %2491 }
 0xc9f   : > { %v2499_v55 = vsel %vm1712_vm4, %v2498_v54, %v2492_v53 }
 0xca2   : > { %v2496_v56 = vpop.permute.xlu1 %2495 }
 0xca3   : > { %v2500_v57 = vsel %vm1714_vm5, %v2499_v55, %v2496_v56 }
 0xca4   : > { %v2501_v58 = vpack.c.bf16 %v2500_v57, %v2500_v57 }
 0xca6   : > { %3341 = vmatmul.mubr.msk.bf16.vlgmr.msra.gmra.mrb[40].mxu0 %vm1130_vm1, %v2501_v58 }
 0xca7   : > { %3360 = vmatprep.mubr.msk.bf16.mxu0 %vm4152_vm0, %v4151_v0 }
 0xd79   : > { %v2562_v60 = vpop.f32.mrb[40].mxu0 }
 0xd7a   : > { %v2563_v61 = vadd.f32 %v3107_v59, %v2562_v60  ;;  %v3342_v62 = vpop.f32.mrb[41].mxu0 }
 0xd7b   : > { %v2565_v63 = vpop.f32.mrb[42].mxu0 }
 0xd7c   : > { %v3343_v1 = vpop.f32.mrb[43].mxu0  ;;  %v2568_v2 = vadd.f32 %v2563_v61, %v4901_v38  ;;  %v3595_v38 = vld [vmem:[%s5210_s15] sm:$0xff]  }
 0xd7d   : > { %3353 = vmatpush3.bf16.msra.mxu0 %v3595_v38 }
 0xd7e   : > { %v2569_v5 = vsel %vm1130_vm1, %v2568_v2, 0.0  ;;  %3354 = vmatprep.subr.bf16.mxu0 %v4151_v0 }
 0xd7f   : > { %2570 = vadd.xlane.f32.xlu1 %v2569_v5 }
 0xd81   : > { %3355 = vmatpush3.bf16.msra.mxu0 %v3596_v13 }
 0xd82   : > { %3356 = vmatprep.subr.bf16.mxu0 %v4151_v0 }
 0xd85   : > { %3357 = vmatpush3.bf16.msra.mxu0 %v3597_v23 }
 0xd86   : > { %3358 = vmatprep.subr.bf16.mxu0 %v4151_v0  ;;  %v3117_v0 = vld [vmem:[%s5214_s13] ss:$0 sm:$0xff]  ;;  %s5217_s13 = sld [smem:[#allocation61_spill]] }
 0xd89   : > { %3359 = vmatpush3.bf16.msra.mxu0 %v3598_v24 }
 0xd8c   : > { %s5035_s4 = scalar_lea.hbm %s5217_s13, %s3126_s16 }
 0xe0c   : > { %v2571_v6 = vpop.xlane.xlu1 %2570 }
 0xe0d   : > { %v2572_v7 = vmul.f32 0.03125, %v2571_v6 }
 0xe0f   : > { %v2573_v8 = vsub.f32 %v2568_v2, %v2572_v7 }
 0xe11   : > { %v2574_v9 = vmul.f32 %v2573_v8, %v2573_v8 }
 0xe13   : > { %v2575_v10 = vsel %vm1130_vm1, %v2574_v9, 0.0 }
 0xe14   : > { %2576 = vadd.xlane.f32.xlu0 %v2575_v10 }
 0xea1   : > { %v2577_v14 = vpop.xlane.xlu0 %2576 }
 0xea2   : > { %v2578_v15 = vmul.f32 0.03125, %v2577_v14 }
 0xea4   : > { %v2579_v16 = vadd.f32 1e-05, %v2578_v15 }
 0xea6   : > { %3633 = vrsqrt.f32 %v2579_v16 }
 0xeb0   : > { %v3634_v17 = vpop.eup %3633 }
 0xeb1   : > { %v2581_v19 = vmul.f32 %v3634_v17, %v2573_v8 }
 0xeb3   : > { %v2589_v3 = vmul.f32 %v3111_v18, %v2581_v19 }
 0xeb5   : > { %v2597_v21 = vadd.f32 %v3112_v20, %v2589_v3 }
 0xeb7   : > { %v2598_v22 = vpack.c.bf16 %v2597_v21, %v2597_v21 }
 0xeb9   : > { %3349 = vmatmul.mubr.msk.bf16.vlgmr.msra.gmra.mrb[48].mxu1 %vm1130_vm1, %v2598_v22 }
 0xf8c   : > { %v2659_v26 = vpop.f32.mrb[48].mxu1 }
 0xf8d   : > { %v2660_v27 = vadd.f32 %v3113_v25, %v2659_v26  ;;  %v3350_v28 = vpop.f32.mrb[49].mxu1 }
 0xf8e   : > { %v2662_v29 = vpop.f32.mrb[50].mxu1 }
 0xf8f   : > { %v2665_v30 = vmax.f32 %v2660_v27, 0.0  ;;  %v3351_v31 = vpop.f32.mrb[51].mxu1 }
 0xf91   : > { %v2666_v32 = vpack.c.bf16 %v2665_v30, %v2665_v30 }
 0xf93   : > { %3361 = vmatmul.mubr.msk.bf16.vlgmr.msra.gmra.mrb[44].mxu0 %vm2706_vm6, %v2666_v32 }
0x1066   : > { %v2744_v33 = vpop.f32.mrb[44].mxu0 }
0x1067   : > { %v2745_v34 = vadd.f32 %v3117_v0, %v2744_v33  ;;  %v3362_v35 = vpop.f32.mrb[45].mxu0 }
0x1068   : > { %v2747_v36 = vpop.f32.mrb[46].mxu0 }
0x1069   : > { %v3363_v37 = vpop.f32.mrb[47].mxu0  ;;  %v2750_v39 = vadd.f32 %v2745_v34, %v2597_v21 }
0x106b   : > { %v2751_v40 = vsel %vm1130_vm1, %v2750_v39, 0.0 }
0x106c   : > { %2752 = vadd.xlane.f32.xlu0 %v2751_v40 }
0x10f9   : > { %v2753_v41 = vpop.xlane.xlu0 %2752 }
0x10fa   : > { %v2754_v42 = vmul.f32 0.03125, %v2753_v41 }
0x10fc   : > { %v2755_v43 = vsub.f32 %v2750_v39, %v2754_v42 }
0x10fe   : > { %v2756_v44 = vmul.f32 %v2755_v43, %v2755_v43 }
0x1100   : > { %v2757_v45 = vsel %vm1130_vm1, %v2756_v44, 0.0 }
0x1101   : > { %2758 = vadd.xlane.f32.xlu1 %v2757_v45 }
0x118e   : > { %v2759_v46 = vpop.xlane.xlu1 %2758 }
0x118f   : > { %v2760_v47 = vmul.f32 0.03125, %v2759_v46 }
0x1191   : > { %v2761_v48 = vadd.f32 1e-05, %v2760_v47 }
0x1193   : > { %3635 = vrsqrt.f32 %v2761_v48 }
0x119d   : > { %v3636_v49 = vpop.eup %3635 }
0x119e   : > { %v2763_v50 = vmul.f32 %v3636_v49, %v2755_v43 }
0x11a0   : > { %v2771_v52 = vmul.f32 %v3123_v4, %v2763_v50 }
0x11a2   : > { %v2779_v53 = vadd.f32 %v3124_v51, %v2771_v52 }
0x11a4   : > { %2780 = vst.msk [vmem:[%s1088_s27] sm:$0xff] %vm1130_vm1, %v2779_v53 }
0x11a5   : > { %4046 = shalt.err (!%p4043_p4)
}
0x11a6   : > { %s4047_s26 = scalar_lea.hbm %s5035_s4, 128  ;;  %s4051_s28 = scalar_lea.hbm %s5217_s13, 256 }
0x11a7   : > { %p4048_p10 = scmp.ne.s32.totalorder %s5035_s4, %s4047_s26  ;;  %p4052_p9 = scmp.lt.u32.totalorder %s5035_s4, %s5217_s13 }
0x11a8   : > { %p4053_p8 = scmp.lt.u32.totalorder %s4051_s28, %s4047_s26  ;;  %p4055_p0 = scmp.lt.u32.totalorder %s4047_s26, %s5035_s4 }
0x11a9   : > { %p4049_p5 = pnand %p4048_p10, %p5218_p12 }
0x11aa   : > { %p4054_p11 = por %p4053_p8, %p4052_p9 }
0x11ab   : > { %p4050_p7 = pneg %p4049_p5 }
0x11ac   : > { %p4056_p13 = por %p4055_p0, %p4054_p11 }
0x11ae   : > { %p4057_p1 = pnand %p4056_p13, %p4050_p7 }
0x11b0   : > { %4060 = shalt.err (!%p4057_p1)
}
0x11b1   : > { %3416 = dma.vmem_to_hbm [thread:$0]  (%p5218_p12), %s5037_s12, 128, %s5035_s4, %s2782_s21  }
0x11b2 PF: > { %s2807_s22 = sand.u32 1, %s4119_s8   ;;  %p5219_p3 = scmp.ne.s32.totalorder %s5186_s20, 0 }
0x11b3   : > { %p5220_p6 = scmp.ge.s32.totalorder %s4131_s30, 2  ;;  %s2808_s1 = scalar_lea.sflag [#allocation4], %s2807_s22 }
0x11b5   : > { %p3463_p2 = pnand %p5220_p6, %p5219_p3 }
0x11b7   : > { %4114 = dma.done.wait (!%p3463_p2), %s2808_s1, 128  }
0x11b8   : > { %4116 = vsyncadd (!%p3463_p2), %s2808_s1, 4294967168  ;;  %p50_p4 = scmp.ge.s32.totalorder %s4607_s2, 4   ;;  %s5221_s8 = smov %s4123_s5 }
0x11b9   : > { %s5222_s5 = smov %s4127_s9  ;;  %s5223_s9 = smov %s4618_s23 }
0x11ba   : > { %s5224_s30 = smov %s4607_s2  ;;  %52 = sbr.rel (!%p50_p4) target bundleno = 40 (0x28), region = 244 }
0x11c1   :  { %2813 = vsyncpa [#allocation3], 1 }
0x11c2   :  { %2815 = vsyncpa [#allocation3 + $0x1], 1 }
0x11c3   :  { %2816 = vsyncpa [#allocation6], 1 }
0x11c4   :  { %2818 = vsyncpa [#allocation6 + $0x1], 1 }
0x11c5   :  { %2819 = vsyncpa [#allocation9], 1 }
0x11c6   :  { %2820 = vsyncpa [#allocation12], 1 }
0x11c7   :  { %2821 = vsyncpa [#allocation15], 1 }
0x11c8   :  { %2822 = vsyncpa [#allocation18], 1 }
0x11c9   :  { %2823 = vsyncpa [#allocation21], 1 }
0x11ca   :  { %2824 = vsyncpa [#allocation24], 1 }
0x11cb   :  { %2825 = vsyncpa [#allocation4], 1 }
0x11cc   :  { %2827 = vsyncpa [#allocation4 + $0x1], 1 }

</bundles_post_ra>
